<compile_context>
chip_gen: v7x
topology: tpu7x:2x2x1
jax: 0.10.0
libtpu: 0.0.40
codegen_flags: <defaults>
</compile_context>

<pallas_src>
import math

import jax
import jax.numpy as jnp
import numpy as np
from jax.experimental import pallas as pl
from jax.experimental.pallas import tpu as pltpu

# ---- small synthetic "phobert-base" config (scaled down) ----
B, S, H = 2, 8, 32          # batch, seq, hidden
NUM_HEADS = 4
HEAD_DIM = H // NUM_HEADS
FFN = 4 * H
LAYERS = 2
VOCAB = 64
MAX_POS = S + 2
NUM_CLASSES = 3
PAD_ID = 1                  # RoBERTa padding_idx
LN_EPS = 1e-5
DTYPE = jnp.float32
MM_DTYPE = jnp.bfloat16     # matmul operand dtype (f32 accumulation)

BATCH_TILE = 1              # sequences per grid block (parallel axis -> v7x's 2 TensorCores)
NB = B // BATCH_TILE
ROWS = BATCH_TILE * S       # activation rows per grid block


# ----------------------------- kernel helpers -----------------------------
def _layer_norm(x, g, b):
    mu = jnp.mean(x, axis=-1, keepdims=True)
    var = jnp.mean(jnp.square(x - mu), axis=-1, keepdims=True)
    return (x - mu) * jax.lax.rsqrt(var + LN_EPS) * g + b


def _gelu(x):
    # TODO(synk): HF PhoBERT uses erf-exact GELU; tanh approximation kept for Mosaic-safe lowering.
    c = math.sqrt(2.0 / math.pi)
    return 0.5 * x * (1.0 + jnp.tanh(c * (x + 0.044715 * x * x * x)))


# ----------------------------- fused per-layer Pallas kernel -----------------------------
def phobert_layer_kernel(
        x_ref, emb_g_ref, emb_b_ref,
        wqkv_ref, bqkv_ref, wo_ref, bo_ref, ln1g_ref, ln1b_ref,
        wi_ref, bi_ref, wf_ref, bf_ref, ln2g_ref, ln2b_ref,
        wd_ref, bd_ref, wp_ref, bp_ref, labels_ref,
        logits_ref, probs_ref, preds_ref, nll_ref,
        x_sc, ctx_sc):
    f32 = jnp.float32
    l = pl.program_id(1)
    scale = 1.0 / math.sqrt(HEAD_DIM)

    # Init the carried activation with the embedding LayerNorm on the first layer step.
    @pl.when(l == 0)
    def _():
        x_sc[...] = _layer_norm(x_ref[...], emb_g_ref[...], emb_b_ref[...])

    x = x_sc[...]                                   # (ROWS, H) f32
    x_bf = x.astype(MM_DTYPE)

    # ---- fused QKV projection: one lane-dense matmul per layer ----
    qkv = jnp.dot(x_bf, wqkv_ref[...], preferred_element_type=f32) + bqkv_ref[...]   # (ROWS, 3H)

    # ---- attention scores / context, batched over the batch tile per head ----
    # No attention mask: matches the torch module (HF defaults attention_mask to all-ones).
    for h in range(NUM_HEADS):                      # static head loop (toy NUM_HEADS=4)
        lo = h * HEAD_DIM
        q_h = qkv[:, lo:lo + HEAD_DIM].reshape(BATCH_TILE, S, HEAD_DIM).astype(MM_DTYPE)
        k_h = qkv[:, H + lo:H + lo + HEAD_DIM].reshape(BATCH_TILE, S, HEAD_DIM).astype(MM_DTYPE)
        v_h = qkv[:, 2 * H + lo:2 * H + lo + HEAD_DIM].reshape(BATCH_TILE, S, HEAD_DIM).astype(MM_DTYPE)
        s = jnp.einsum('bqd,bkd->bqk', q_h, k_h, preferred_element_type=f32) * scale
        m = jnp.max(s, axis=-1, keepdims=True)
        p = jnp.exp(s - m)
        p = p / jnp.sum(p, axis=-1, keepdims=True)  # exact softmax (probs sum to 1)
        ctx_h = jnp.einsum('bqk,bkd->bqd', p.astype(MM_DTYPE), v_h, preferred_element_type=f32)
        # Write each head into its lane-contiguous slot of the context slab (no lane concat).
        ctx_sc[:, lo:lo + HEAD_DIM] = ctx_h.reshape(ROWS, HEAD_DIM)

    # ---- single full-width output projection + post-LN residual (BERT style) ----
    attn = jnp.dot(ctx_sc[...].astype(MM_DTYPE), wo_ref[...],
                   preferred_element_type=f32) + bo_ref[...]
    h1 = _layer_norm(x + attn, ln1g_ref[...], ln1b_ref[...])

    # ---- feed-forward ----
    ff = jnp.dot(h1.astype(MM_DTYPE), wi_ref[...], preferred_element_type=f32) + bi_ref[...]
    ff = _gelu(ff)
    ff = jnp.dot(ff.astype(MM_DTYPE), wf_ref[...], preferred_element_type=f32) + bf_ref[...]
    x_new = _layer_norm(h1 + ff, ln2g_ref[...], ln2b_ref[...])
    x_sc[...] = x_new

    # ---- classification head on the <s> (first) token, only on the last layer step ----
    @pl.when(l == LAYERS - 1)
    def _():
        pooled = x_new.reshape(BATCH_TILE, S, H)[:, 0, :]                       # (BT, H)
        hcls = jnp.tanh(jnp.dot(pooled.astype(MM_DTYPE), wd_ref[...],
                                preferred_element_type=f32) + bd_ref[...])
        logits = jnp.dot(hcls.astype(MM_DTYPE), wp_ref[...],
                         preferred_element_type=f32) + bp_ref[...]
        logits_ref[...] = logits

        # softmax (exact)
        m2 = jnp.max(logits, axis=-1, keepdims=True)
        e = jnp.exp(logits - m2)
        denom = jnp.sum(e, axis=-1, keepdims=True)
        probs_ref[...] = e / denom

        # argmax on logits (first occurrence of the max, same as torch.argmax)
        col = jax.lax.broadcasted_iota(jnp.int32, logits.shape, 1)
        preds_ref[...] = jnp.min(jnp.where(logits == m2, col, jnp.int32(NUM_CLASSES)),
                                 axis=-1, keepdims=True)

        # per-row NLL (exact log-softmax); mean over B finished in the wrapper
        logp = (logits - m2) - jnp.log(denom)
        one_hot = (col == labels_ref[...]).astype(f32)
        nll_ref[...] = -jnp.sum(one_hot * logp, axis=-1, keepdims=True)


# ----------------------------- parameters -----------------------------
def init_params(key):
    keys = iter(jax.random.split(key, 8 + 6 * LAYERS))

    def normal(shape):
        return 0.02 * jax.random.normal(next(keys), shape, dtype=DTYPE)

    params = {
        'word_emb': normal((VOCAB, H)).at[PAD_ID].set(0.0),
        'pos_emb': normal((MAX_POS, H)),
        'type_emb': normal((1, H)),
        'emb_ln_g': jnp.ones((1, H), DTYPE),
        'emb_ln_b': jnp.zeros((1, H), DTYPE),
        'cls_wd': normal((H, H)),
        'cls_bd': jnp.zeros((1, H), DTYPE),
        'cls_wp': normal((H, NUM_CLASSES)),
        'cls_bp': jnp.zeros((1, NUM_CLASSES), DTYPE),
        'layers': [],
    }
    for _ in range(LAYERS):
        params['layers'].append({
            'wq': normal((H, H)), 'bq': jnp.zeros((1, H), DTYPE),
            'wk': normal((H, H)), 'bk': jnp.zeros((1, H), DTYPE),
            'wv': normal((H, H)), 'bv': jnp.zeros((1, H), DTYPE),
            'wo': normal((H, H)), 'bo': jnp.zeros((1, H), DTYPE),
            'ln1_g': jnp.ones((1, H), DTYPE), 'ln1_b': jnp.zeros((1, H), DTYPE),
            'wi': normal((H, FFN)), 'bi': jnp.zeros((1, FFN), DTYPE),
            'wf': normal((FFN, H)), 'bf': jnp.zeros((1, H), DTYPE),
            'ln2_g': jnp.ones((1, H), DTYPE), 'ln2_b': jnp.zeros((1, H), DTYPE),
        })
    return params


def pack_params(params):
    """Stack per-layer weights (leading layer axis) and fuse Q/K/V on the output axis."""
    layers = params['layers']

    def stack(fn, dtype=None):
        out = jnp.stack([fn(lyr) for lyr in layers])
        return out.astype(dtype) if dtype is not None else out

    return {
        'wqkv': stack(lambda l: jnp.concatenate([l['wq'], l['wk'], l['wv']], axis=1), MM_DTYPE),
        'bqkv': stack(lambda l: jnp.concatenate([l['bq'], l['bk'], l['bv']], axis=1)),
        'wo': stack(lambda l: l['wo'], MM_DTYPE), 'bo': stack(lambda l: l['bo']),
        'ln1_g': stack(lambda l: l['ln1_g']), 'ln1_b': stack(lambda l: l['ln1_b']),
        'wi': stack(lambda l: l['wi'], MM_DTYPE), 'bi': stack(lambda l: l['bi']),
        'wf': stack(lambda l: l['wf'], MM_DTYPE), 'bf': stack(lambda l: l['bf']),
        'ln2_g': stack(lambda l: l['ln2_g']), 'ln2_b': stack(lambda l: l['ln2_b']),
        'cls_wd': params['cls_wd'].astype(MM_DTYPE), 'cls_bd': params['cls_bd'],
        'cls_wp': params['cls_wp'].astype(MM_DTYPE), 'cls_bp': params['cls_bp'],
    }


# ----------------------------- forward -----------------------------
def forward(params, packed, input_ids, labels):
    # RoBERTa position ids: cumsum over non-pad mask, offset by padding_idx.
    mask = (input_ids != PAD_ID).astype(jnp.int32)
    position_ids = jnp.cumsum(mask, axis=1) * mask + PAD_ID

    # Embedding gathers are plain-JAX glue; everything else runs in the pipelined kernel.
    emb = (jnp.take(params['word_emb'], input_ids, axis=0)
           + jnp.take(params['pos_emb'], position_ids, axis=0)
           + params['type_emb'][0])
    x3d = emb.reshape(NB, ROWS, H).astype(DTYPE)                 # per-batch-block activation slabs
    labels3d = labels.reshape(NB, BATCH_TILE, 1).astype(jnp.int32)

    def lspec(shape):    # per-layer stacked weight (LAYERS, d1, d2): stream layer l
        return pl.BlockSpec((None,) + shape, lambda b, l: (l, 0, 0))

    def cspec(shape):    # layer-independent weight: resident (same block every step)
        return pl.BlockSpec(shape, lambda b, l: (0,) * len(shape))

    def bspec(shape):    # per-batch-block array (NB, d1, d2)
        return pl.BlockSpec((None,) + shape, lambda b, l: (b, 0, 0))

    in_specs = [
        bspec((ROWS, H)),                                  # embeddings
        cspec((1, H)), cspec((1, H)),                      # emb LayerNorm
        lspec((H, 3 * H)), lspec((1, 3 * H)),              # fused QKV
        lspec((H, H)), lspec((1, H)),                      # attn out proj
        lspec((1, H)), lspec((1, H)),                      # ln1
        lspec((H, FFN)), lspec((1, FFN)),                  # ffn in
        lspec((FFN, H)), lspec((1, H)),                    # ffn out
        lspec((1, H)), lspec((1, H)),                      # ln2
        cspec((H, H)), cspec((1, H)),                      # cls dense
        cspec((H, NUM_CLASSES)), cspec((1, NUM_CLASSES)),  # cls out proj
        bspec((BATCH_TILE, 1)),                            # labels
    ]
    out_specs = [
        bspec((BATCH_TILE, NUM_CLASSES)),                  # logits
        bspec((BATCH_TILE, NUM_CLASSES)),                  # probs
        bspec((BATCH_TILE, 1)),                            # preds
        bspec((BATCH_TILE, 1)),                            # per-row NLL
    ]
    out_shapes = (
        jax.ShapeDtypeStruct((NB, BATCH_TILE, NUM_CLASSES), DTYPE),
        jax.ShapeDtypeStruct((NB, BATCH_TILE, NUM_CLASSES), DTYPE),
        jax.ShapeDtypeStruct((NB, BATCH_TILE, 1), jnp.int32),
        jax.ShapeDtypeStruct((NB, BATCH_TILE, 1), DTYPE),
    )

    logits, probs, preds, nll = pl.pallas_call(
        phobert_layer_kernel,
        out_shape=out_shapes,
        grid_spec=pltpu.PrefetchScalarGridSpec(
            num_scalar_prefetch=0,
            grid=(NB, LAYERS),                             # batch blocks (parallel) x layers (pipelined)
            in_specs=in_specs,
            out_specs=out_specs,
            scratch_shapes=[pltpu.VMEM((ROWS, H), DTYPE),  # carried activation
                            pltpu.VMEM((ROWS, H), DTYPE)], # attention context slab
        ),
        compiler_params=pltpu.CompilerParams(
            dimension_semantics=("parallel", "arbitrary"),
            vmem_limit_bytes=48 * 1024 * 1024),            # headroom for real-scale layers, < v7x 64 MiB
    )(x3d, params['emb_ln_g'], params['emb_ln_b'],
      packed['wqkv'], packed['bqkv'], packed['wo'], packed['bo'],
      packed['ln1_g'], packed['ln1_b'],
      packed['wi'], packed['bi'], packed['wf'], packed['bf'],
      packed['ln2_g'], packed['ln2_b'],
      packed['cls_wd'], packed['cls_bd'], packed['cls_wp'], packed['cls_bp'],
      labels3d)

    logits = logits.reshape(B, NUM_CLASSES)
    probs = probs.reshape(B, NUM_CLASSES)
    preds = preds.reshape(B)
    loss = jnp.sum(nll) / jnp.float32(B)                   # mean cross-entropy over the batch
    return {'loss': loss, 'logits': logits, 'probs': probs, 'preds': preds}


if __name__ == "__main__":
    key = jax.random.PRNGKey(0)
    pkey, idkey, lkey = jax.random.split(key, 3)
    params = init_params(pkey)
    packed = pack_params(params)

    input_ids = jax.random.randint(idkey, (B, S), 2, VOCAB, dtype=jnp.int32)
    labels = jax.random.randint(lkey, (B,), 0, NUM_CLASSES, dtype=jnp.int32)

    out = forward(params, packed, input_ids, labels)
    jax.block_until_ready(out)
    out['preds'] = np.asarray(jax.device_get(out['preds']))   # mirror .cpu().numpy()
    print("KERNEL_OK")
</pallas_src>

<mosaic_0001>
module attributes {stable_mosaic.version = 11 : i64} {
  func.func @phobert_layer_kernel(%arg0: i32, %arg1: i32, %arg2: memref<1x8x32xf32, #tpu.memory_space<vmem>>, %arg3: memref<1x32xf32, #tpu.memory_space<vmem>>, %arg4: memref<1x32xf32, #tpu.memory_space<vmem>>, %arg5: memref<1x32x96xbf16, #tpu.memory_space<vmem>>, %arg6: memref<1x1x96xf32, #tpu.memory_space<vmem>>, %arg7: memref<1x32x32xbf16, #tpu.memory_space<vmem>>, %arg8: memref<1x1x32xf32, #tpu.memory_space<vmem>>, %arg9: memref<1x1x32xf32, #tpu.memory_space<vmem>>, %arg10: memref<1x1x32xf32, #tpu.memory_space<vmem>>, %arg11: memref<1x32x128xbf16, #tpu.memory_space<vmem>>, %arg12: memref<1x1x128xf32, #tpu.memory_space<vmem>>, %arg13: memref<1x128x32xbf16, #tpu.memory_space<vmem>>, %arg14: memref<1x1x32xf32, #tpu.memory_space<vmem>>, %arg15: memref<1x1x32xf32, #tpu.memory_space<vmem>>, %arg16: memref<1x1x32xf32, #tpu.memory_space<vmem>>, %arg17: memref<32x32xbf16, #tpu.memory_space<vmem>>, %arg18: memref<1x32xf32, #tpu.memory_space<vmem>>, %arg19: memref<32x3xbf16, #tpu.memory_space<vmem>>, %arg20: memref<1x3xf32, #tpu.memory_space<vmem>>, %arg21: memref<1x1x1xi32, #tpu.memory_space<vmem>>, %arg22: memref<1x1x3xf32, #tpu.memory_space<vmem>>, %arg23: memref<1x1x3xf32, #tpu.memory_space<vmem>>, %arg24: memref<1x1x1xi32, #tpu.memory_space<vmem>>, %arg25: memref<1x1x1xf32, #tpu.memory_space<vmem>>, %arg26: memref<8x32xf32, #tpu.memory_space<vmem>>, %arg27: memref<8x32xf32, #tpu.memory_space<vmem>>) attributes {dimension_semantics = [#tpu.dimension_semantics<parallel>, #tpu.dimension_semantics<arbitrary>], iteration_bounds = array<i64: 2, 2>, scalar_prefetch = 0 : i64, scratch_operands = 2 : i64, tpu.core_type = #tpu.core_type<tc>, window_params = [{transform_indices = @transform_0, window_bounds = array<i64: 1, 8, 32>}, {pipeline_mode = #tpu.pipeline_mode<synchronous>, transform_indices = @transform_1, window_bounds = array<i64: 1, 32>}, {pipeline_mode = #tpu.pipeline_mode<synchronous>, transform_indices = @transform_2, window_bounds = array<i64: 1, 32>}, {transform_indices = @transform_3, window_bounds = array<i64: 1, 32, 96>}, {transform_indices = @transform_4, window_bounds = array<i64: 1, 1, 96>}, {transform_indices = @transform_5, window_bounds = array<i64: 1, 32, 32>}, {transform_indices = @transform_6, window_bounds = array<i64: 1, 1, 32>}, {transform_indices = @transform_7, window_bounds = array<i64: 1, 1, 32>}, {transform_indices = @transform_8, window_bounds = array<i64: 1, 1, 32>}, {transform_indices = @transform_9, window_bounds = array<i64: 1, 32, 128>}, {transform_indices = @transform_10, window_bounds = array<i64: 1, 1, 128>}, {transform_indices = @transform_11, window_bounds = array<i64: 1, 128, 32>}, {transform_indices = @transform_12, window_bounds = array<i64: 1, 1, 32>}, {transform_indices = @transform_13, window_bounds = array<i64: 1, 1, 32>}, {transform_indices = @transform_14, window_bounds = array<i64: 1, 1, 32>}, {pipeline_mode = #tpu.pipeline_mode<synchronous>, transform_indices = @transform_15, window_bounds = array<i64: 32, 32>}, {pipeline_mode = #tpu.pipeline_mode<synchronous>, transform_indices = @transform_16, window_bounds = array<i64: 1, 32>}, {pipeline_mode = #tpu.pipeline_mode<synchronous>, transform_indices = @transform_17, window_bounds = array<i64: 32, 3>}, {pipeline_mode = #tpu.pipeline_mode<synchronous>, transform_indices = @transform_18, window_bounds = array<i64: 1, 3>}, {transform_indices = @transform_19, window_bounds = array<i64: 1, 1, 1>}, {transform_indices = @transform_20, window_bounds = array<i64: 1, 1, 3>}, {transform_indices = @transform_21, window_bounds = array<i64: 1, 1, 3>}, {transform_indices = @transform_22, window_bounds = array<i64: 1, 1, 1>}, {transform_indices = @transform_23, window_bounds = array<i64: 1, 1, 1>}]} {
    %c0_i32 = arith.constant 0 : i32
    %0 = arith.cmpi eq, %arg1, %c0_i32 : i32
    %1 = arith.extui %0 : i1 to i32
    %c0_i32_0 = arith.constant 0 : i32
    %2 = arith.cmpi ne, %1, %c0_i32_0 : i32
    scf.if %2 {
      %c0_85 = arith.constant 0 : index
      %c0_86 = arith.constant 0 : index
      %c0_87 = arith.constant 0 : index
      %208 = vector.load %arg2[%c0_85, %c0_86, %c0_87] : memref<1x8x32xf32, #tpu.memory_space<vmem>>, vector<1x8x32xf32>
      %209 = vector.shape_cast %208 : vector<1x8x32xf32> to vector<8x32xf32>
      %c0_88 = arith.constant 0 : index
      %c0_89 = arith.constant 0 : index
      %210 = vector.load %arg3[%c0_88, %c0_89] : memref<1x32xf32, #tpu.memory_space<vmem>>, vector<1x32xf32>
      %c0_90 = arith.constant 0 : index
      %c0_91 = arith.constant 0 : index
      %211 = vector.load %arg4[%c0_90, %c0_91] : memref<1x32xf32, #tpu.memory_space<vmem>>, vector<1x32xf32>
      %cst_92 = arith.constant dense<0.000000e+00> : vector<8xf32>
      %212 = vector.multi_reduction <add>, %209, %cst_92 [1] : vector<8x32xf32> to vector<8xf32>
      %213 = vector.shape_cast %212 : vector<8xf32> to vector<8x1xf32>
      %cst_93 = arith.constant 3.200000e+01 : f32
      %214 = vector.broadcast %cst_93 : f32 to vector<8x1xf32>
      %215 = arith.divf %213, %214 : vector<8x1xf32>
      %216 = vector.broadcast %215 : vector<8x1xf32> to vector<8x32xf32>
      %217 = arith.subf %209, %216 : vector<8x32xf32>
      %218 = arith.mulf %217, %217 : vector<8x32xf32>
      %cst_94 = arith.constant dense<0.000000e+00> : vector<8xf32>
      %219 = vector.multi_reduction <add>, %218, %cst_94 [1] : vector<8x32xf32> to vector<8xf32>
      %220 = vector.shape_cast %219 : vector<8xf32> to vector<8x1xf32>
      %cst_95 = arith.constant 3.200000e+01 : f32
      %221 = vector.broadcast %cst_95 : f32 to vector<8x1xf32>
      %222 = arith.divf %220, %221 : vector<8x1xf32>
      %223 = vector.broadcast %215 : vector<8x1xf32> to vector<8x32xf32>
      %224 = arith.subf %209, %223 : vector<8x32xf32>
      %cst_96 = arith.constant 9.99999974E-6 : f32
      %225 = vector.broadcast %cst_96 : f32 to vector<8x1xf32>
      %226 = arith.addf %222, %225 : vector<8x1xf32>
      %227 = math.rsqrt %226 : vector<8x1xf32>
      %228 = vector.broadcast %227 : vector<8x1xf32> to vector<8x32xf32>
      %229 = arith.mulf %224, %228 : vector<8x32xf32>
      %230 = vector.broadcast %210 : vector<1x32xf32> to vector<8x32xf32>
      %231 = arith.mulf %229, %230 : vector<8x32xf32>
      %232 = vector.broadcast %211 : vector<1x32xf32> to vector<8x32xf32>
      %233 = arith.addf %231, %232 : vector<8x32xf32>
      %c0_97 = arith.constant 0 : index
      %c0_98 = arith.constant 0 : index
      %234 = vector.load %arg26[%c0_97, %c0_98] : memref<8x32xf32, #tpu.memory_space<vmem>>, vector<8x32xf32>
      tpu.vector_store %arg26[%c0_97, %c0_98], %233 {strides = array<i32>} : memref<8x32xf32, #tpu.memory_space<vmem>>, vector<8x32xf32>,
    } else {
    }
    %c0 = arith.constant 0 : index
    %c0_1 = arith.constant 0 : index
    %3 = vector.load %arg26[%c0, %c0_1] : memref<8x32xf32, #tpu.memory_space<vmem>>, vector<8x32xf32>
    %4 = arith.truncf %3 : vector<8x32xf32> to vector<8x32xbf16>
    %c0_2 = arith.constant 0 : index
    %c0_3 = arith.constant 0 : index
    %c0_4 = arith.constant 0 : index
    %5 = vector.load %arg5[%c0_2, %c0_3, %c0_4] : memref<1x32x96xbf16, #tpu.memory_space<vmem>>, vector<1x32x96xbf16>
    %6 = vector.shape_cast %5 : vector<1x32x96xbf16> to vector<32x96xbf16>
    %cst = arith.constant dense<0.000000e+00> : vector<8x96xf32>
    %7 = tpu.matmul %4, %6, %cst {dimension_numbers = #tpu.dot_dimension_numbers<[1], [0], [0], [1], [0, 0, 1, 1], [], []>} : vector<8x32xbf16>, vector<32x96xbf16>, vector<8x96xf32> -> vector<8x96xf32>
    %c0_5 = arith.constant 0 : index
    %c0_6 = arith.constant 0 : index
    %c0_7 = arith.constant 0 : index
    %8 = vector.load %arg6[%c0_5, %c0_6, %c0_7] : memref<1x1x96xf32, #tpu.memory_space<vmem>>, vector<1x1x96xf32>
    %9 = vector.shape_cast %8 : vector<1x1x96xf32> to vector<1x96xf32>
    %10 = vector.broadcast %9 : vector<1x96xf32> to vector<8x96xf32>
    %11 = arith.addf %7, %10 : vector<8x96xf32>
    %12 = vector.extract_strided_slice %11 {offsets = [0, 0], sizes = [8, 8], strides = [1, 1]} : vector<8x96xf32> to vector<8x8xf32>
    %13 = vector.shape_cast %12 : vector<8x8xf32> to vector<1x8x8xf32>
    %14 = arith.truncf %13 : vector<1x8x8xf32> to vector<1x8x8xbf16>
    %15 = vector.extract_strided_slice %11 {offsets = [0, 32], sizes = [8, 8], strides = [1, 1]} : vector<8x96xf32> to vector<8x8xf32>
    %16 = vector.shape_cast %15 : vector<8x8xf32> to vector<1x8x8xf32>
    %17 = arith.truncf %16 : vector<1x8x8xf32> to vector<1x8x8xbf16>
    %18 = vector.extract_strided_slice %11 {offsets = [0, 64], sizes = [8, 8], strides = [1, 1]} : vector<8x96xf32> to vector<8x8xf32>
    %19 = vector.shape_cast %18 : vector<8x8xf32> to vector<1x8x8xf32>
    %20 = arith.truncf %19 : vector<1x8x8xf32> to vector<1x8x8xbf16>
    "tpu.trace_start"() <{level = 10 : i32, message = "bqd,bkd->bqk"}> : () -> ()
    %cst_8 = arith.constant dense<0.000000e+00> : vector<1x8x8xf32>
    %21 = tpu.matmul %14, %17, %cst_8 {dimension_numbers = #tpu.dot_dimension_numbers<[2], [2], [1], [1], [0, 0, 0, 1, 1, 1], [0], [0]>} : vector<1x8x8xbf16>, vector<1x8x8xbf16>, vector<1x8x8xf32> -> vector<1x8x8xf32>
    "tpu.trace_stop"() : () -> ()
    %cst_9 = arith.constant 0.353553385 : f32
    %22 = vector.broadcast %cst_9 : f32 to vector<1x8x8xf32>
    %23 = arith.mulf %21, %22 : vector<1x8x8xf32>
    %cst_10 = arith.constant dense<0xFF800000> : vector<1x8xf32>
    %24 = vector.multi_reduction <maximumf>, %23, %cst_10 [2] : vector<1x8x8xf32> to vector<1x8xf32>
    %25 = vector.shape_cast %24 : vector<1x8xf32> to vector<1x8x1xf32>
    %26 = vector.broadcast %25 : vector<1x8x1xf32> to vector<1x8x8xf32>
    %27 = arith.subf %23, %26 : vector<1x8x8xf32>
    %28 = math.exp %27 : vector<1x8x8xf32>
    %cst_11 = arith.constant dense<0.000000e+00> : vector<1x8xf32>
    %29 = vector.multi_reduction <add>, %28, %cst_11 [2] : vector<1x8x8xf32> to vector<1x8xf32>
    %30 = vector.shape_cast %29 : vector<1x8xf32> to vector<1x8x1xf32>
    %31 = vector.broadcast %30 : vector<1x8x1xf32> to vector<1x8x8xf32>
    %32 = arith.divf %28, %31 : vector<1x8x8xf32>
    %33 = arith.truncf %32 : vector<1x8x8xf32> to vector<1x8x8xbf16>
    "tpu.trace_start"() <{level = 10 : i32, message = "bqk,bkd->bqd"}> : () -> ()
    %cst_12 = arith.constant dense<0.000000e+00> : vector<1x8x8xf32>
    %34 = tpu.matmul %33, %20, %cst_12 {dimension_numbers = #tpu.dot_dimension_numbers<[2], [1], [1], [2], [0, 0, 0, 1, 1, 2], [0], [0]>} : vector<1x8x8xbf16>, vector<1x8x8xbf16>, vector<1x8x8xf32> -> vector<1x8x8xf32>
    "tpu.trace_stop"() : () -> ()
    %35 = vector.shape_cast %34 : vector<1x8x8xf32> to vector<8x8xf32>
    %c0_13 = arith.constant 0 : index
    %c0_14 = arith.constant 0 : index
    %36 = vector.load %arg27[%c0_13, %c0_14] : memref<8x32xf32, #tpu.memory_space<vmem>>, vector<8x8xf32>
    tpu.vector_store %arg27[%c0_13, %c0_14], %35 {strides = array<i32>} : memref<8x32xf32, #tpu.memory_space<vmem>>, vector<8x8xf32>,
    %37 = vector.extract_strided_slice %11 {offsets = [0, 8], sizes = [8, 8], strides = [1, 1]} : vector<8x96xf32> to vector<8x8xf32>
    %38 = vector.shape_cast %37 : vector<8x8xf32> to vector<1x8x8xf32>
    %39 = arith.truncf %38 : vector<1x8x8xf32> to vector<1x8x8xbf16>
    %40 = vector.extract_strided_slice %11 {offsets = [0, 40], sizes = [8, 8], strides = [1, 1]} : vector<8x96xf32> to vector<8x8xf32>
    %41 = vector.shape_cast %40 : vector<8x8xf32> to vector<1x8x8xf32>
    %42 = arith.truncf %41 : vector<1x8x8xf32> to vector<1x8x8xbf16>
    %43 = vector.extract_strided_slice %11 {offsets = [0, 72], sizes = [8, 8], strides = [1, 1]} : vector<8x96xf32> to vector<8x8xf32>
    %44 = vector.shape_cast %43 : vector<8x8xf32> to vector<1x8x8xf32>
    %45 = arith.truncf %44 : vector<1x8x8xf32> to vector<1x8x8xbf16>
    "tpu.trace_start"() <{level = 10 : i32, message = "bqd,bkd->bqk"}> : () -> ()
    %cst_15 = arith.constant dense<0.000000e+00> : vector<1x8x8xf32>
    %46 = tpu.matmul %39, %42, %cst_15 {dimension_numbers = #tpu.dot_dimension_numbers<[2], [2], [1], [1], [0, 0, 0, 1, 1, 1], [0], [0]>} : vector<1x8x8xbf16>, vector<1x8x8xbf16>, vector<1x8x8xf32> -> vector<1x8x8xf32>
    "tpu.trace_stop"() : () -> ()
    %cst_16 = arith.constant 0.353553385 : f32
    %47 = vector.broadcast %cst_16 : f32 to vector<1x8x8xf32>
    %48 = arith.mulf %46, %47 : vector<1x8x8xf32>
    %cst_17 = arith.constant dense<0xFF800000> : vector<1x8xf32>
    %49 = vector.multi_reduction <maximumf>, %48, %cst_17 [2] : vector<1x8x8xf32> to vector<1x8xf32>
    %50 = vector.shape_cast %49 : vector<1x8xf32> to vector<1x8x1xf32>
    %51 = vector.broadcast %50 : vector<1x8x1xf32> to vector<1x8x8xf32>
    %52 = arith.subf %48, %51 : vector<1x8x8xf32>
    %53 = math.exp %52 : vector<1x8x8xf32>
    %cst_18 = arith.constant dense<0.000000e+00> : vector<1x8xf32>
    %54 = vector.multi_reduction <add>, %53, %cst_18 [2] : vector<1x8x8xf32> to vector<1x8xf32>
    %55 = vector.shape_cast %54 : vector<1x8xf32> to vector<1x8x1xf32>
    %56 = vector.broadcast %55 : vector<1x8x1xf32> to vector<1x8x8xf32>
    %57 = arith.divf %53, %56 : vector<1x8x8xf32>
    %58 = arith.truncf %57 : vector<1x8x8xf32> to vector<1x8x8xbf16>
    "tpu.trace_start"() <{level = 10 : i32, message = "bqk,bkd->bqd"}> : () -> ()
    %cst_19 = arith.constant dense<0.000000e+00> : vector<1x8x8xf32>
    %59 = tpu.matmul %58, %45, %cst_19 {dimension_numbers = #tpu.dot_dimension_numbers<[2], [1], [1], [2], [0, 0, 0, 1, 1, 2], [0], [0]>} : vector<1x8x8xbf16>, vector<1x8x8xbf16>, vector<1x8x8xf32> -> vector<1x8x8xf32>
    "tpu.trace_stop"() : () -> ()
    %60 = vector.shape_cast %59 : vector<1x8x8xf32> to vector<8x8xf32>
    %c0_20 = arith.constant 0 : index
    %c8 = arith.constant 8 : index
    %61 = vector.load %arg27[%c0_20, %c8] : memref<8x32xf32, #tpu.memory_space<vmem>>, vector<8x8xf32>
    tpu.vector_store %arg27[%c0_20, %c8], %60 {strides = array<i32>} : memref<8x32xf32, #tpu.memory_space<vmem>>, vector<8x8xf32>,
    %62 = vector.extract_strided_slice %11 {offsets = [0, 16], sizes = [8, 8], strides = [1, 1]} : vector<8x96xf32> to vector<8x8xf32>
    %63 = vector.shape_cast %62 : vector<8x8xf32> to vector<1x8x8xf32>
    %64 = arith.truncf %63 : vector<1x8x8xf32> to vector<1x8x8xbf16>
    %65 = vector.extract_strided_slice %11 {offsets = [0, 48], sizes = [8, 8], strides = [1, 1]} : vector<8x96xf32> to vector<8x8xf32>
    %66 = vector.shape_cast %65 : vector<8x8xf32> to vector<1x8x8xf32>
    %67 = arith.truncf %66 : vector<1x8x8xf32> to vector<1x8x8xbf16>
    %68 = vector.extract_strided_slice %11 {offsets = [0, 80], sizes = [8, 8], strides = [1, 1]} : vector<8x96xf32> to vector<8x8xf32>
    %69 = vector.shape_cast %68 : vector<8x8xf32> to vector<1x8x8xf32>
    %70 = arith.truncf %69 : vector<1x8x8xf32> to vector<1x8x8xbf16>
    "tpu.trace_start"() <{level = 10 : i32, message = "bqd,bkd->bqk"}> : () -> ()
    %cst_21 = arith.constant dense<0.000000e+00> : vector<1x8x8xf32>
    %71 = tpu.matmul %64, %67, %cst_21 {dimension_numbers = #tpu.dot_dimension_numbers<[2], [2], [1], [1], [0, 0, 0, 1, 1, 1], [0], [0]>} : vector<1x8x8xbf16>, vector<1x8x8xbf16>, vector<1x8x8xf32> -> vector<1x8x8xf32>
    "tpu.trace_stop"() : () -> ()
    %cst_22 = arith.constant 0.353553385 : f32
    %72 = vector.broadcast %cst_22 : f32 to vector<1x8x8xf32>
    %73 = arith.mulf %71, %72 : vector<1x8x8xf32>
    %cst_23 = arith.constant dense<0xFF800000> : vector<1x8xf32>
    %74 = vector.multi_reduction <maximumf>, %73, %cst_23 [2] : vector<1x8x8xf32> to vector<1x8xf32>
    %75 = vector.shape_cast %74 : vector<1x8xf32> to vector<1x8x1xf32>
    %76 = vector.broadcast %75 : vector<1x8x1xf32> to vector<1x8x8xf32>
    %77 = arith.subf %73, %76 : vector<1x8x8xf32>
    %78 = math.exp %77 : vector<1x8x8xf32>
    %cst_24 = arith.constant dense<0.000000e+00> : vector<1x8xf32>
    %79 = vector.multi_reduction <add>, %78, %cst_24 [2] : vector<1x8x8xf32> to vector<1x8xf32>
    %80 = vector.shape_cast %79 : vector<1x8xf32> to vector<1x8x1xf32>
    %81 = vector.broadcast %80 : vector<1x8x1xf32> to vector<1x8x8xf32>
    %82 = arith.divf %78, %81 : vector<1x8x8xf32>
    %83 = arith.truncf %82 : vector<1x8x8xf32> to vector<1x8x8xbf16>
    "tpu.trace_start"() <{level = 10 : i32, message = "bqk,bkd->bqd"}> : () -> ()
    %cst_25 = arith.constant dense<0.000000e+00> : vector<1x8x8xf32>
    %84 = tpu.matmul %83, %70, %cst_25 {dimension_numbers = #tpu.dot_dimension_numbers<[2], [1], [1], [2], [0, 0, 0, 1, 1, 2], [0], [0]>} : vector<1x8x8xbf16>, vector<1x8x8xbf16>, vector<1x8x8xf32> -> vector<1x8x8xf32>
    "tpu.trace_stop"() : () -> ()
    %85 = vector.shape_cast %84 : vector<1x8x8xf32> to vector<8x8xf32>
    %c0_26 = arith.constant 0 : index
    %c16 = arith.constant 16 : index
    %86 = vector.load %arg27[%c0_26, %c16] : memref<8x32xf32, #tpu.memory_space<vmem>>, vector<8x8xf32>
    tpu.vector_store %arg27[%c0_26, %c16], %85 {strides = array<i32>} : memref<8x32xf32, #tpu.memory_space<vmem>>, vector<8x8xf32>,
    %87 = vector.extract_strided_slice %11 {offsets = [0, 24], sizes = [8, 8], strides = [1, 1]} : vector<8x96xf32> to vector<8x8xf32>
    %88 = vector.shape_cast %87 : vector<8x8xf32> to vector<1x8x8xf32>
    %89 = arith.truncf %88 : vector<1x8x8xf32> to vector<1x8x8xbf16>
    %90 = vector.extract_strided_slice %11 {offsets = [0, 56], sizes = [8, 8], strides = [1, 1]} : vector<8x96xf32> to vector<8x8xf32>
    %91 = vector.shape_cast %90 : vector<8x8xf32> to vector<1x8x8xf32>
    %92 = arith.truncf %91 : vector<1x8x8xf32> to vector<1x8x8xbf16>
    %93 = vector.extract_strided_slice %11 {offsets = [0, 88], sizes = [8, 8], strides = [1, 1]} : vector<8x96xf32> to vector<8x8xf32>
    %94 = vector.shape_cast %93 : vector<8x8xf32> to vector<1x8x8xf32>
    %95 = arith.truncf %94 : vector<1x8x8xf32> to vector<1x8x8xbf16>
    "tpu.trace_start"() <{level = 10 : i32, message = "bqd,bkd->bqk"}> : () -> ()
    %cst_27 = arith.constant dense<0.000000e+00> : vector<1x8x8xf32>
    %96 = tpu.matmul %89, %92, %cst_27 {dimension_numbers = #tpu.dot_dimension_numbers<[2], [2], [1], [1], [0, 0, 0, 1, 1, 1], [0], [0]>} : vector<1x8x8xbf16>, vector<1x8x8xbf16>, vector<1x8x8xf32> -> vector<1x8x8xf32>
    "tpu.trace_stop"() : () -> ()
    %cst_28 = arith.constant 0.353553385 : f32
    %97 = vector.broadcast %cst_28 : f32 to vector<1x8x8xf32>
    %98 = arith.mulf %96, %97 : vector<1x8x8xf32>
    %cst_29 = arith.constant dense<0xFF800000> : vector<1x8xf32>
    %99 = vector.multi_reduction <maximumf>, %98, %cst_29 [2] : vector<1x8x8xf32> to vector<1x8xf32>
    %100 = vector.shape_cast %99 : vector<1x8xf32> to vector<1x8x1xf32>
    %101 = vector.broadcast %100 : vector<1x8x1xf32> to vector<1x8x8xf32>
    %102 = arith.subf %98, %101 : vector<1x8x8xf32>
    %103 = math.exp %102 : vector<1x8x8xf32>
    %cst_30 = arith.constant dense<0.000000e+00> : vector<1x8xf32>
    %104 = vector.multi_reduction <add>, %103, %cst_30 [2] : vector<1x8x8xf32> to vector<1x8xf32>
    %105 = vector.shape_cast %104 : vector<1x8xf32> to vector<1x8x1xf32>
    %106 = vector.broadcast %105 : vector<1x8x1xf32> to vector<1x8x8xf32>
    %107 = arith.divf %103, %106 : vector<1x8x8xf32>
    %108 = arith.truncf %107 : vector<1x8x8xf32> to vector<1x8x8xbf16>
    "tpu.trace_start"() <{level = 10 : i32, message = "bqk,bkd->bqd"}> : () -> ()
    %cst_31 = arith.constant dense<0.000000e+00> : vector<1x8x8xf32>
    %109 = tpu.matmul %108, %95, %cst_31 {dimension_numbers = #tpu.dot_dimension_numbers<[2], [1], [1], [2], [0, 0, 0, 1, 1, 2], [0], [0]>} : vector<1x8x8xbf16>, vector<1x8x8xbf16>, vector<1x8x8xf32> -> vector<1x8x8xf32>
    "tpu.trace_stop"() : () -> ()
    %110 = vector.shape_cast %109 : vector<1x8x8xf32> to vector<8x8xf32>
    %c0_32 = arith.constant 0 : index
    %c24 = arith.constant 24 : index
    %111 = vector.load %arg27[%c0_32, %c24] : memref<8x32xf32, #tpu.memory_space<vmem>>, vector<8x8xf32>
    tpu.vector_store %arg27[%c0_32, %c24], %110 {strides = array<i32>} : memref<8x32xf32, #tpu.memory_space<vmem>>, vector<8x8xf32>,
    %c0_33 = arith.constant 0 : index
    %c0_34 = arith.constant 0 : index
    %112 = vector.load %arg27[%c0_33, %c0_34] : memref<8x32xf32, #tpu.memory_space<vmem>>, vector<8x32xf32>
    %113 = arith.truncf %112 : vector<8x32xf32> to vector<8x32xbf16>
    %c0_35 = arith.constant 0 : index
    %c0_36 = arith.constant 0 : index
    %c0_37 = arith.constant 0 : index
    %114 = vector.load %arg7[%c0_35, %c0_36, %c0_37] : memref<1x32x32xbf16, #tpu.memory_space<vmem>>, vector<1x32x32xbf16>
    %115 = vector.shape_cast %114 : vector<1x32x32xbf16> to vector<32x32xbf16>
    %cst_38 = arith.constant dense<0.000000e+00> : vector<8x32xf32>
    %116 = tpu.matmul %113, %115, %cst_38 {dimension_numbers = #tpu.dot_dimension_numbers<[1], [0], [0], [1], [0, 0, 1, 1], [], []>} : vector<8x32xbf16>, vector<32x32xbf16>, vector<8x32xf32> -> vector<8x32xf32>
    %c0_39 = arith.constant 0 : index
    %c0_40 = arith.constant 0 : index
    %c0_41 = arith.constant 0 : index
    %117 = vector.load %arg8[%c0_39, %c0_40, %c0_41] : memref<1x1x32xf32, #tpu.memory_space<vmem>>, vector<1x1x32xf32>
    %118 = vector.shape_cast %117 : vector<1x1x32xf32> to vector<1x32xf32>
    %119 = vector.broadcast %118 : vector<1x32xf32> to vector<8x32xf32>
    %120 = arith.addf %116, %119 : vector<8x32xf32>
    %121 = arith.addf %3, %120 : vector<8x32xf32>
    %c0_42 = arith.constant 0 : index
    %c0_43 = arith.constant 0 : index
    %c0_44 = arith.constant 0 : index
    %122 = vector.load %arg9[%c0_42, %c0_43, %c0_44] : memref<1x1x32xf32, #tpu.memory_space<vmem>>, vector<1x1x32xf32>
    %123 = vector.shape_cast %122 : vector<1x1x32xf32> to vector<1x32xf32>
    %c0_45 = arith.constant 0 : index
    %c0_46 = arith.constant 0 : index
    %c0_47 = arith.constant 0 : index
    %124 = vector.load %arg10[%c0_45, %c0_46, %c0_47] : memref<1x1x32xf32, #tpu.memory_space<vmem>>, vector<1x1x32xf32>
    %125 = vector.shape_cast %124 : vector<1x1x32xf32> to vector<1x32xf32>
    %cst_48 = arith.constant dense<0.000000e+00> : vector<8xf32>
    %126 = vector.multi_reduction <add>, %121, %cst_48 [1] : vector<8x32xf32> to vector<8xf32>
    %127 = vector.shape_cast %126 : vector<8xf32> to vector<8x1xf32>
    %cst_49 = arith.constant 3.200000e+01 : f32
    %128 = vector.broadcast %cst_49 : f32 to vector<8x1xf32>
    %129 = arith.divf %127, %128 : vector<8x1xf32>
    %130 = vector.broadcast %129 : vector<8x1xf32> to vector<8x32xf32>
    %131 = arith.subf %121, %130 : vector<8x32xf32>
    %132 = arith.mulf %131, %131 : vector<8x32xf32>
    %cst_50 = arith.constant dense<0.000000e+00> : vector<8xf32>
    %133 = vector.multi_reduction <add>, %132, %cst_50 [1] : vector<8x32xf32> to vector<8xf32>
    %134 = vector.shape_cast %133 : vector<8xf32> to vector<8x1xf32>
    %cst_51 = arith.constant 3.200000e+01 : f32
    %135 = vector.broadcast %cst_51 : f32 to vector<8x1xf32>
    %136 = arith.divf %134, %135 : vector<8x1xf32>
    %137 = vector.broadcast %129 : vector<8x1xf32> to vector<8x32xf32>
    %138 = arith.subf %121, %137 : vector<8x32xf32>
    %cst_52 = arith.constant 9.99999974E-6 : f32
    %139 = vector.broadcast %cst_52 : f32 to vector<8x1xf32>
    %140 = arith.addf %136, %139 : vector<8x1xf32>
    %141 = math.rsqrt %140 : vector<8x1xf32>
    %142 = vector.broadcast %141 : vector<8x1xf32> to vector<8x32xf32>
    %143 = arith.mulf %138, %142 : vector<8x32xf32>
    %144 = vector.broadcast %123 : vector<1x32xf32> to vector<8x32xf32>
    %145 = arith.mulf %143, %144 : vector<8x32xf32>
    %146 = vector.broadcast %125 : vector<1x32xf32> to vector<8x32xf32>
    %147 = arith.addf %145, %146 : vector<8x32xf32>
    %148 = arith.truncf %147 : vector<8x32xf32> to vector<8x32xbf16>
    %c0_53 = arith.constant 0 : index
    %c0_54 = arith.constant 0 : index
    %c0_55 = arith.constant 0 : index
    %149 = vector.load %arg11[%c0_53, %c0_54, %c0_55] : memref<1x32x128xbf16, #tpu.memory_space<vmem>>, vector<1x32x128xbf16>
    %150 = vector.shape_cast %149 : vector<1x32x128xbf16> to vector<32x128xbf16>
    %cst_56 = arith.constant dense<0.000000e+00> : vector<8x128xf32>
    %151 = tpu.matmul %148, %150, %cst_56 {dimension_numbers = #tpu.dot_dimension_numbers<[1], [0], [0], [1], [0, 0, 1, 1], [], []>} : vector<8x32xbf16>, vector<32x128xbf16>, vector<8x128xf32> -> vector<8x128xf32>
    %c0_57 = arith.constant 0 : index
    %c0_58 = arith.constant 0 : index
    %c0_59 = arith.constant 0 : index
    %152 = vector.load %arg12[%c0_57, %c0_58, %c0_59] : memref<1x1x128xf32, #tpu.memory_space<vmem>>, vector<1x1x128xf32>
    %153 = vector.shape_cast %152 : vector<1x1x128xf32> to vector<1x128xf32>
    %154 = vector.broadcast %153 : vector<1x128xf32> to vector<8x128xf32>
    %155 = arith.addf %151, %154 : vector<8x128xf32>
    %cst_60 = arith.constant 5.000000e-01 : f32
    %156 = vector.broadcast %cst_60 : f32 to vector<8x128xf32>
    %157 = arith.mulf %156, %155 : vector<8x128xf32>
    %cst_61 = arith.constant 4.471500e-02 : f32
    %158 = vector.broadcast %cst_61 : f32 to vector<8x128xf32>
    %159 = arith.mulf %158, %155 : vector<8x128xf32>
    %160 = arith.mulf %159, %155 : vector<8x128xf32>
    %161 = arith.mulf %160, %155 : vector<8x128xf32>
    %162 = arith.addf %155, %161 : vector<8x128xf32>
    %cst_62 = arith.constant 0.797884583 : f32
    %163 = vector.broadcast %cst_62 : f32 to vector<8x128xf32>
    %164 = arith.mulf %163, %162 : vector<8x128xf32>
    %165 = math.tanh %164 : vector<8x128xf32>
    %cst_63 = arith.constant 1.000000e+00 : f32
    %166 = vector.broadcast %cst_63 : f32 to vector<8x128xf32>
    %167 = arith.addf %166, %165 : vector<8x128xf32>
    %168 = arith.mulf %157, %167 : vector<8x128xf32>
    %169 = arith.truncf %168 : vector<8x128xf32> to vector<8x128xbf16>
    %c0_64 = arith.constant 0 : index
    %c0_65 = arith.constant 0 : index
    %c0_66 = arith.constant 0 : index
    %170 = vector.load %arg13[%c0_64, %c0_65, %c0_66] : memref<1x128x32xbf16, #tpu.memory_space<vmem>>, vector<1x128x32xbf16>
    %171 = vector.shape_cast %170 : vector<1x128x32xbf16> to vector<128x32xbf16>
    %cst_67 = arith.constant dense<0.000000e+00> : vector<8x32xf32>
    %172 = tpu.matmul %169, %171, %cst_67 {dimension_numbers = #tpu.dot_dimension_numbers<[1], [0], [0], [1], [0, 0, 1, 1], [], []>} : vector<8x128xbf16>, vector<128x32xbf16>, vector<8x32xf32> -> vector<8x32xf32>
    %c0_68 = arith.constant 0 : index
    %c0_69 = arith.constant 0 : index
    %c0_70 = arith.constant 0 : index
    %173 = vector.load %arg14[%c0_68, %c0_69, %c0_70] : memref<1x1x32xf32, #tpu.memory_space<vmem>>, vector<1x1x32xf32>
    %174 = vector.shape_cast %173 : vector<1x1x32xf32> to vector<1x32xf32>
    %175 = vector.broadcast %174 : vector<1x32xf32> to vector<8x32xf32>
    %176 = arith.addf %172, %175 : vector<8x32xf32>
    %177 = arith.addf %147, %176 : vector<8x32xf32>
    %c0_71 = arith.constant 0 : index
    %c0_72 = arith.constant 0 : index
    %c0_73 = arith.constant 0 : index
    %178 = vector.load %arg15[%c0_71, %c0_72, %c0_73] : memref<1x1x32xf32, #tpu.memory_space<vmem>>, vector<1x1x32xf32>
    %179 = vector.shape_cast %178 : vector<1x1x32xf32> to vector<1x32xf32>
    %c0_74 = arith.constant 0 : index
    %c0_75 = arith.constant 0 : index
    %c0_76 = arith.constant 0 : index
    %180 = vector.load %arg16[%c0_74, %c0_75, %c0_76] : memref<1x1x32xf32, #tpu.memory_space<vmem>>, vector<1x1x32xf32>
    %181 = vector.shape_cast %180 : vector<1x1x32xf32> to vector<1x32xf32>
    %cst_77 = arith.constant dense<0.000000e+00> : vector<8xf32>
    %182 = vector.multi_reduction <add>, %177, %cst_77 [1] : vector<8x32xf32> to vector<8xf32>
    %183 = vector.shape_cast %182 : vector<8xf32> to vector<8x1xf32>
    %cst_78 = arith.constant 3.200000e+01 : f32
    %184 = vector.broadcast %cst_78 : f32 to vector<8x1xf32>
    %185 = arith.divf %183, %184 : vector<8x1xf32>
    %186 = vector.broadcast %185 : vector<8x1xf32> to vector<8x32xf32>
    %187 = arith.subf %177, %186 : vector<8x32xf32>
    %188 = arith.mulf %187, %187 : vector<8x32xf32>
    %cst_79 = arith.constant dense<0.000000e+00> : vector<8xf32>
    %189 = vector.multi_reduction <add>, %188, %cst_79 [1] : vector<8x32xf32> to vector<8xf32>
    %190 = vector.shape_cast %189 : vector<8xf32> to vector<8x1xf32>
    %cst_80 = arith.constant 3.200000e+01 : f32
    %191 = vector.broadcast %cst_80 : f32 to vector<8x1xf32>
    %192 = arith.divf %190, %191 : vector<8x1xf32>
    %193 = vector.broadcast %185 : vector<8x1xf32> to vector<8x32xf32>
    %194 = arith.subf %177, %193 : vector<8x32xf32>
    %cst_81 = arith.constant 9.99999974E-6 : f32
    %195 = vector.broadcast %cst_81 : f32 to vector<8x1xf32>
    %196 = arith.addf %192, %195 : vector<8x1xf32>
    %197 = math.rsqrt %196 : vector<8x1xf32>
    %198 = vector.broadcast %197 : vector<8x1xf32> to vector<8x32xf32>
    %199 = arith.mulf %194, %198 : vector<8x32xf32>
    %200 = vector.broadcast %179 : vector<1x32xf32> to vector<8x32xf32>
    %201 = arith.mulf %199, %200 : vector<8x32xf32>
    %202 = vector.broadcast %181 : vector<1x32xf32> to vector<8x32xf32>
    %203 = arith.addf %201, %202 : vector<8x32xf32>
    %c0_82 = arith.constant 0 : index
    %c0_83 = arith.constant 0 : index
    %204 = vector.load %arg26[%c0_82, %c0_83] : memref<8x32xf32, #tpu.memory_space<vmem>>, vector<8x32xf32>
    tpu.vector_store %arg26[%c0_82, %c0_83], %203 {strides = array<i32>} : memref<8x32xf32, #tpu.memory_space<vmem>>, vector<8x32xf32>,
    %c1_i32 = arith.constant 1 : i32
    %205 = arith.cmpi eq, %arg1, %c1_i32 : i32
    %206 = arith.extui %205 : i1 to i32
    %c0_i32_84 = arith.constant 0 : i32
    %207 = arith.cmpi ne, %206, %c0_i32_84 : i32
    scf.if %207 {
      %208 = vector.shape_cast %203 : vector<8x32xf32> to vector<1x8x32xf32>
      %209 = vector.extract_strided_slice %208 {offsets = [0, 0, 0], sizes = [1, 1, 32], strides = [1, 1, 1]} : vector<1x8x32xf32> to vector<1x1x32xf32>
      %210 = vector.shape_cast %209 : vector<1x1x32xf32> to vector<1x32xf32>
      %211 = arith.truncf %210 : vector<1x32xf32> to vector<1x32xbf16>
      %c0_85 = arith.constant 0 : index
      %c0_86 = arith.constant 0 : index
      %212 = vector.load %arg17[%c0_85, %c0_86] : memref<32x32xbf16, #tpu.memory_space<vmem>>, vector<32x32xbf16>
      %cst_87 = arith.constant dense<0.000000e+00> : vector<1x32xf32>
      %213 = tpu.matmul %211, %212, %cst_87 {dimension_numbers = #tpu.dot_dimension_numbers<[1], [0], [0], [1], [0, 0, 1, 1], [], []>} : vector<1x32xbf16>, vector<32x32xbf16>, vector<1x32xf32> -> vector<1x32xf32>
      %c0_88 = arith.constant 0 : index
      %c0_89 = arith.constant 0 : index
      %214 = vector.load %arg18[%c0_88, %c0_89] : memref<1x32xf32, #tpu.memory_space<vmem>>, vector<1x32xf32>
      %215 = arith.addf %213, %214 : vector<1x32xf32>
      %216 = math.tanh %215 : vector<1x32xf32>
      %217 = arith.truncf %216 : vector<1x32xf32> to vector<1x32xbf16>
      %c0_90 = arith.constant 0 : index
      %c0_91 = arith.constant 0 : index
      %218 = vector.load %arg19[%c0_90, %c0_91] : memref<32x3xbf16, #tpu.memory_space<vmem>>, vector<32x3xbf16>
      %cst_92 = arith.constant dense<0.000000e+00> : vector<1x3xf32>
      %219 = tpu.matmul %217, %218, %cst_92 {dimension_numbers = #tpu.dot_dimension_numbers<[1], [0], [0], [1], [0, 0, 1, 1], [], []>} : vector<1x32xbf16>, vector<32x3xbf16>, vector<1x3xf32> -> vector<1x3xf32>
      %c0_93 = arith.constant 0 : index
      %c0_94 = arith.constant 0 : index
      %220 = vector.load %arg20[%c0_93, %c0_94] : memref<1x3xf32, #tpu.memory_space<vmem>>, vector<1x3xf32>
      %221 = arith.addf %219, %220 : vector<1x3xf32>
      %c0_95 = arith.constant 0 : index
      %c0_96 = arith.constant 0 : index
      %c0_97 = arith.constant 0 : index
      %222 = vector.load %arg22[%c0_95, %c0_96, %c0_97] : memref<1x1x3xf32, #tpu.memory_space<vmem>>, vector<1x1x3xf32>
      %223 = vector.shape_cast %222 : vector<1x1x3xf32> to vector<1x3xf32>
      %224 = vector.shape_cast %221 : vector<1x3xf32> to vector<1x1x3xf32>
      tpu.vector_store %arg22[%c0_95, %c0_96, %c0_97], %224 {strides = array<i32>} : memref<1x1x3xf32, #tpu.memory_space<vmem>>, vector<1x1x3xf32>,
      %cst_98 = arith.constant dense<0xFF800000> : vector<1xf32>
      %225 = vector.multi_reduction <maximumf>, %221, %cst_98 [1] : vector<1x3xf32> to vector<1xf32>
      %226 = vector.shape_cast %225 : vector<1xf32> to vector<1x1xf32>
      %227 = vector.broadcast %226 : vector<1x1xf32> to vector<1x3xf32>
      %228 = arith.subf %221, %227 : vector<1x3xf32>
      %229 = math.exp %228 : vector<1x3xf32>
      %cst_99 = arith.constant dense<0.000000e+00> : vector<1xf32>
      %230 = vector.multi_reduction <add>, %229, %cst_99 [1] : vector<1x3xf32> to vector<1xf32>
      %231 = vector.shape_cast %230 : vector<1xf32> to vector<1x1xf32>
      %232 = vector.broadcast %231 : vector<1x1xf32> to vector<1x3xf32>
      %233 = arith.divf %229, %232 : vector<1x3xf32>
      %c0_100 = arith.constant 0 : index
      %c0_101 = arith.constant 0 : index
      %c0_102 = arith.constant 0 : index
      %234 = vector.load %arg23[%c0_100, %c0_101, %c0_102] : memref<1x1x3xf32, #tpu.memory_space<vmem>>, vector<1x1x3xf32>
      %235 = vector.shape_cast %234 : vector<1x1x3xf32> to vector<1x3xf32>
      %236 = vector.shape_cast %233 : vector<1x3xf32> to vector<1x1x3xf32>
      tpu.vector_store %arg23[%c0_100, %c0_101, %c0_102], %236 {strides = array<i32>} : memref<1x1x3xf32, #tpu.memory_space<vmem>>, vector<1x1x3xf32>,
      %237 = tpu.iota {dimensions = array<i32: 1>} : vector<1x3xi32>
      %238 = vector.broadcast %226 : vector<1x1xf32> to vector<1x3xf32>
      %239 = arith.cmpf oeq, %221, %238 : vector<1x3xf32>
      %c3_i32 = arith.constant 3 : i32
      %240 = vector.broadcast %c3_i32 : i32 to vector<1x3xi32>
      %241 = arith.select %239, %237, %240 : vector<1x3xi1>, vector<1x3xi32>
      %cst_103 = arith.constant dense<2147483647> : vector<1xi32>
      %242 = vector.multi_reduction <minsi>, %241, %cst_103 [1] : vector<1x3xi32> to vector<1xi32>
      %243 = vector.shape_cast %242 : vector<1xi32> to vector<1x1xi32>
      %c0_104 = arith.constant 0 : index
      %c0_105 = arith.constant 0 : index
      %c0_106 = arith.constant 0 : index
      %244 = vector.load %arg24[%c0_104, %c0_105, %c0_106] : memref<1x1x1xi32, #tpu.memory_space<vmem>>, vector<1x1x1xi32>
      %245 = vector.shape_cast %244 : vector<1x1x1xi32> to vector<1x1xi32>
      %246 = vector.shape_cast %243 : vector<1x1xi32> to vector<1x1x1xi32>
      tpu.vector_store %arg24[%c0_104, %c0_105, %c0_106], %246 {strides = array<i32>} : memref<1x1x1xi32, #tpu.memory_space<vmem>>, vector<1x1x1xi32>,
      %247 = vector.broadcast %226 : vector<1x1xf32> to vector<1x3xf32>
      %248 = arith.subf %221, %247 : vector<1x3xf32>
      %249 = math.log %231 : vector<1x1xf32>
      %250 = vector.broadcast %249 : vector<1x1xf32> to vector<1x3xf32>
      %251 = arith.subf %248, %250 : vector<1x3xf32>
      %c0_107 = arith.constant 0 : index
      %c0_108 = arith.constant 0 : index
      %c0_109 = arith.constant 0 : index
      %252 = vector.load %arg21[%c0_107, %c0_108, %c0_109] : memref<1x1x1xi32, #tpu.memory_space<vmem>>, vector<1x1x1xi32>
      %253 = vector.shape_cast %252 : vector<1x1x1xi32> to vector<1x1xi32>
      %254 = vector.broadcast %253 : vector<1x1xi32> to vector<1x3xi32>
      %255 = arith.cmpi eq, %237, %254 : vector<1x3xi32>
      %256 = arith.extui %255 : vector<1x3xi1> to vector<1x3xi32>
      %257 = arith.sitofp %256 : vector<1x3xi32> to vector<1x3xf32>
      %258 = arith.mulf %257, %251 : vector<1x3xf32>
      %cst_110 = arith.constant dense<0.000000e+00> : vector<1xf32>
      %259 = vector.multi_reduction <add>, %258, %cst_110 [1] : vector<1x3xf32> to vector<1xf32>
      %260 = vector.shape_cast %259 : vector<1xf32> to vector<1x1xf32>
      %cst_111 = arith.constant 0.000000e+00 : f32
      %261 = vector.broadcast %cst_111 : f32 to vector<1x1xf32>
      %262 = arith.subf %261, %260 : vector<1x1xf32>
      %c0_112 = arith.constant 0 : index
      %c0_113 = arith.constant 0 : index
      %c0_114 = arith.constant 0 : index
      %263 = vector.load %arg25[%c0_112, %c0_113, %c0_114] : memref<1x1x1xf32, #tpu.memory_space<vmem>>, vector<1x1x1xf32>
      %264 = vector.shape_cast %263 : vector<1x1x1xf32> to vector<1x1xf32>
      %265 = vector.shape_cast %262 : vector<1x1xf32> to vector<1x1x1xf32>
      tpu.vector_store %arg25[%c0_112, %c0_113, %c0_114], %265 {strides = array<i32>} : memref<1x1x1xf32, #tpu.memory_space<vmem>>, vector<1x1x1xf32>,
    } else {
    }
    return
  }
  func.func @transform_0(%arg0: i32, %arg1: i32) -> (i32, i32, i32) {
    %c0_i32 = arith.constant 0 : i32
    %c0_i32_0 = arith.constant 0 : i32
    %c0_i32_1 = arith.constant 0 : i32
    return %arg0, %c0_i32, %c0_i32_0 : i32, i32, i32
  }
  func.func @transform_1(%arg0: i32, %arg1: i32) -> (i32, i32) {
    %c0_i32 = arith.constant 0 : i32
    %c0_i32_0 = arith.constant 0 : i32
    %c0_i32_1 = arith.constant 0 : i32
    return %c0_i32, %c0_i32_0 : i32, i32
  }
  func.func @transform_2(%arg0: i32, %arg1: i32) -> (i32, i32) {
    %c0_i32 = arith.constant 0 : i32
    %c0_i32_0 = arith.constant 0 : i32
    %c0_i32_1 = arith.constant 0 : i32
    return %c0_i32, %c0_i32_0 : i32, i32
  }
  func.func @transform_3(%arg0: i32, %arg1: i32) -> (i32, i32, i32) {
    %c0_i32 = arith.constant 0 : i32
    %c0_i32_0 = arith.constant 0 : i32
    %c0_i32_1 = arith.constant 0 : i32
    return %arg1, %c0_i32, %c0_i32_0 : i32, i32, i32
  }
  func.func @transform_4(%arg0: i32, %arg1: i32) -> (i32, i32, i32) {
    %c0_i32 = arith.constant 0 : i32
    %c0_i32_0 = arith.constant 0 : i32
    %c0_i32_1 = arith.constant 0 : i32
    return %arg1, %c0_i32, %c0_i32_0 : i32, i32, i32
  }
  func.func @transform_5(%arg0: i32, %arg1: i32) -> (i32, i32, i32) {
    %c0_i32 = arith.constant 0 : i32
    %c0_i32_0 = arith.constant 0 : i32
    %c0_i32_1 = arith.constant 0 : i32
    return %arg1, %c0_i32, %c0_i32_0 : i32, i32, i32
  }
  func.func @transform_6(%arg0: i32, %arg1: i32) -> (i32, i32, i32) {
    %c0_i32 = arith.constant 0 : i32
    %c0_i32_0 = arith.constant 0 : i32
    %c0_i32_1 = arith.constant 0 : i32
    return %arg1, %c0_i32, %c0_i32_0 : i32, i32, i32
  }
  func.func @transform_7(%arg0: i32, %arg1: i32) -> (i32, i32, i32) {
    %c0_i32 = arith.constant 0 : i32
    %c0_i32_0 = arith.constant 0 : i32
    %c0_i32_1 = arith.constant 0 : i32
    return %arg1, %c0_i32, %c0_i32_0 : i32, i32, i32
  }
  func.func @transform_8(%arg0: i32, %arg1: i32) -> (i32, i32, i32) {
    %c0_i32 = arith.constant 0 : i32
    %c0_i32_0 = arith.constant 0 : i32
    %c0_i32_1 = arith.constant 0 : i32
    return %arg1, %c0_i32, %c0_i32_0 : i32, i32, i32
  }
  func.func @transform_9(%arg0: i32, %arg1: i32) -> (i32, i32, i32) {
    %c0_i32 = arith.constant 0 : i32
    %c0_i32_0 = arith.constant 0 : i32
    %c0_i32_1 = arith.constant 0 : i32
    return %arg1, %c0_i32, %c0_i32_0 : i32, i32, i32
  }
  func.func @transform_10(%arg0: i32, %arg1: i32) -> (i32, i32, i32) {
    %c0_i32 = arith.constant 0 : i32
    %c0_i32_0 = arith.constant 0 : i32
    %c0_i32_1 = arith.constant 0 : i32
    return %arg1, %c0_i32, %c0_i32_0 : i32, i32, i32
  }
  func.func @transform_11(%arg0: i32, %arg1: i32) -> (i32, i32, i32) {
    %c0_i32 = arith.constant 0 : i32
    %c0_i32_0 = arith.constant 0 : i32
    %c0_i32_1 = arith.constant 0 : i32
    return %arg1, %c0_i32, %c0_i32_0 : i32, i32, i32
  }
  func.func @transform_12(%arg0: i32, %arg1: i32) -> (i32, i32, i32) {
    %c0_i32 = arith.constant 0 : i32
    %c0_i32_0 = arith.constant 0 : i32
    %c0_i32_1 = arith.constant 0 : i32
    return %arg1, %c0_i32, %c0_i32_0 : i32, i32, i32
  }
  func.func @transform_13(%arg0: i32, %arg1: i32) -> (i32, i32, i32) {
    %c0_i32 = arith.constant 0 : i32
    %c0_i32_0 = arith.constant 0 : i32
    %c0_i32_1 = arith.constant 0 : i32
    return %arg1, %c0_i32, %c0_i32_0 : i32, i32, i32
  }
  func.func @transform_14(%arg0: i32, %arg1: i32) -> (i32, i32, i32) {
    %c0_i32 = arith.constant 0 : i32
    %c0_i32_0 = arith.constant 0 : i32
    %c0_i32_1 = arith.constant 0 : i32
    return %arg1, %c0_i32, %c0_i32_0 : i32, i32, i32
  }
  func.func @transform_15(%arg0: i32, %arg1: i32) -> (i32, i32) {
    %c0_i32 = arith.constant 0 : i32
    %c0_i32_0 = arith.constant 0 : i32
    %c0_i32_1 = arith.constant 0 : i32
    return %c0_i32, %c0_i32_0 : i32, i32
  }
  func.func @transform_16(%arg0: i32, %arg1: i32) -> (i32, i32) {
    %c0_i32 = arith.constant 0 : i32
    %c0_i32_0 = arith.constant 0 : i32
    %c0_i32_1 = arith.constant 0 : i32
    return %c0_i32, %c0_i32_0 : i32, i32
  }
  func.func @transform_17(%arg0: i32, %arg1: i32) -> (i32, i32) {
    %c0_i32 = arith.constant 0 : i32
    %c0_i32_0 = arith.constant 0 : i32
    %c0_i32_1 = arith.constant 0 : i32
    return %c0_i32, %c0_i32_0 : i32, i32
  }
  func.func @transform_18(%arg0: i32, %arg1: i32) -> (i32, i32) {
    %c0_i32 = arith.constant 0 : i32
    %c0_i32_0 = arith.constant 0 : i32
    %c0_i32_1 = arith.constant 0 : i32
    return %c0_i32, %c0_i32_0 : i32, i32
  }
  func.func @transform_19(%arg0: i32, %arg1: i32) -> (i32, i32, i32) {
    %c0_i32 = arith.constant 0 : i32
    %c0_i32_0 = arith.constant 0 : i32
    %c0_i32_1 = arith.constant 0 : i32
    return %arg0, %c0_i32, %c0_i32_0 : i32, i32, i32
  }
  func.func @transform_20(%arg0: i32, %arg1: i32) -> (i32, i32, i32) {
    %c0_i32 = arith.constant 0 : i32
    %c0_i32_0 = arith.constant 0 : i32
    %c0_i32_1 = arith.constant 0 : i32
    return %arg0, %c0_i32, %c0_i32_0 : i32, i32, i32
  }
  func.func @transform_21(%arg0: i32, %arg1: i32) -> (i32, i32, i32) {
    %c0_i32 = arith.constant 0 : i32
    %c0_i32_0 = arith.constant 0 : i32
    %c0_i32_1 = arith.constant 0 : i32
    return %arg0, %c0_i32, %c0_i32_0 : i32, i32, i32
  }
  func.func @transform_22(%arg0: i32, %arg1: i32) -> (i32, i32, i32) {
    %c0_i32 = arith.constant 0 : i32
    %c0_i32_0 = arith.constant 0 : i32
    %c0_i32_1 = arith.constant 0 : i32
    return %arg0, %c0_i32, %c0_i32_0 : i32, i32, i32
  }
  func.func @transform_23(%arg0: i32, %arg1: i32) -> (i32, i32, i32) {
    %c0_i32 = arith.constant 0 : i32
    %c0_i32_0 = arith.constant 0 : i32
    %c0_i32_1 = arith.constant 0 : i32
    return %arg0, %c0_i32, %c0_i32_0 : i32, i32, i32
  }
}

</mosaic_0001>

<bundles_post_ra>
// kernel: tpu_custom_call.1
= control target key start
LH: loop header
LB: loop body
LE: loop exit
PB: predicated region body
PF: predicated region fallthrough
CT: control target
= control target key end

     0   :  { %s3404_s0 = inlined_call_operand.vmem [shape: f32[2,8,32], index: 0, kind: input, shape index: {}]   ;;  %s3405_s1 = inlined_call_operand.vmem [shape: f32[1,32], index: 1, kind: input, shape index: {}]   ;;  %s3406_s2 = inlined_call_operand.vmem [shape: f32[1,32], index: 2, kind: input, shape index: {}]   ;;  %s3407_s3 = inlined_call_operand.vmem [shape: bf16[2,32,96], index: 3, kind: input, shape index: {}]   ;;  %s3408_s4 = inlined_call_operand.vmem [shape: f32[2,1,96], index: 4, kind: input, shape index: {}]   ;;  %s3409_s5 = inlined_call_operand.vmem [shape: bf16[2,32,32], index: 5, kind: input, shape index: {}]   ;;  %s3410_s6 = inlined_call_operand.vmem [shape: f32[2,1,32], index: 6, kind: input, shape index: {}]   ;;  %s3411_s7 = inlined_call_operand.vmem [shape: f32[2,1,32], index: 7, kind: input, shape index: {}]   ;;  %s3412_s8 = inlined_call_operand.vmem [shape: f32[2,1,32], index: 8, kind: input, shape index: {}]   ;;  %s3413_s9 = inlined_call_operand.vmem [shape: bf16[2,32,128], index: 9, kind: input, shape index: {}]   ;;  %s3414_s10 = inlined_call_operand.vmem [shape: f32[2,1,128], index: 10, kind: input, shape index: {}]   ;;  %s3415_s11 = inlined_call_operand.vmem [shape: bf16[2,128,32], index: 11, kind: input, shape index: {}]   ;;  %s3416_s12 = inlined_call_operand.vmem [shape: f32[2,1,32], index: 12, kind: input, shape index: {}]   ;;  %s3417_s13 = inlined_call_operand.vmem [shape: f32[2,1,32], index: 13, kind: input, shape index: {}]   ;;  %s3418_s14 = inlined_call_operand.vmem [shape: f32[2,1,32], index: 14, kind: input, shape index: {}]   ;;  %s3419_s15 = inlined_call_operand.vmem [shape: bf16[32,32], index: 15, kind: input, shape index: {}]   ;;  %s3420_s16 = inlined_call_operand.vmem [shape: f32[1,32], index: 16, kind: input, shape index: {}]   ;;  %s3421_s17 = inlined_call_operand.vmem [shape: bf16[32,3], index: 17, kind: input, shape index: {}]   ;;  %s3422_s18 = inlined_call_operand.vmem [shape: f32[1,3], index: 18, kind: input, shape index: {}]   ;;  %s3423_s19 = inlined_call_operand.vmem [shape: s32[2,1,1], index: 19, kind: input, shape index: {}]   ;;  %s3424_s20 = inlined_call_operand.hbm [shape: f32[2,1,3], index: 20, kind: output, shape index: {0}]   ;;  %s3425_s21 = inlined_call_operand.hbm [shape: f32[2,1,3], index: 21, kind: output, shape index: {1}]   ;;  %s3426_s22 = inlined_call_operand.vmem [shape: s32[2,1,1], index: 22, kind: output, shape index: {2}]   ;;  %s3427_s23 = inlined_call_operand.vmem [shape: f32[2,1,1], index: 23, kind: output, shape index: {3}]  }
   0x1   :  { %3448 = sst [smem:[#allocation24_spill]] %s3404_s0 }
   0x2   :  { %3449 = sst [smem:[#allocation25_spill]] %s3405_s1 }
   0x3   :  { %3450 = sst [smem:[#allocation26_spill]] %s3406_s2 }
   0x4   :  { %3451 = sst [smem:[#allocation27_spill]] %s3407_s3 }
   0x5   :  { %3452 = sst [smem:[#allocation28_spill]] %s3408_s4 }
   0x6   :  { %3453 = sst [smem:[#allocation29_spill]] %s3409_s5 }
   0x7   :  { %3454 = sst [smem:[#allocation30_spill]] %s3410_s6 }
   0x8   :  { %3455 = sst [smem:[#allocation31_spill]] %s3411_s7 }
   0x9   :  { %3456 = sst [smem:[#allocation32_spill]] %s3419_s15 }
   0xa   :  { %3457 = sst [smem:[#allocation33_spill]] %s3420_s16 }
   0xb   :  { %3458 = sst [smem:[#allocation34_spill]] %s3421_s17 }
   0xc   :  { %3459 = sst [smem:[#allocation35_spill]] %s3422_s18 }
   0xd   :  { %3460 = sst [smem:[#allocation36_spill]] %s3423_s19 }
   0xe   :  { %3461 = sst [smem:[#allocation37_spill]] %s3424_s20 }
   0xf   :  { %3462 = sst [smem:[#allocation38_spill]] %s3425_s21 }
  0x10   :  { %3463 = sst [smem:[#allocation39_spill]] %s3426_s22 }
  0x11   :  { %3464 = sst [smem:[#allocation40_spill]] %s3427_s23 }
  0x12   :  { %29 = vsyncpa [#allocation5], 0 }
  0x13   :  { %31 = vsyncpa [#allocation5 + $0x1], 0 }
  0x14   :  { %32 = vsyncpa [#allocation7], 0 }
  0x15   :  { %34 = vsyncpa [#allocation7 + $0x1], 0  ;;  %s2954_s4 = smov 0   ;;  %s2956_s30 = smov 0  }
  0x16   :  { %s2958_s24 = smov 0   ;;  %s2960_s25 = smov 0  }
  0x17   :  { %s2962_s5 = smov 0   ;;  %s2964_s1 = smov 0  }
  0x18   :  { %s2966_s26 = smov 0   ;;  %s2968_s2 = smov 0  }
  0x19 LB: > { %3465 = sst [smem:[#allocation10_spill]] %s2783_s4  ;;  %s2324_s6 = sadd.s32 4294967295, %s2811_s2   ;;  %s2811_s2 = sphi %s2968_s2, %s40_s2   ;;  %s2807_s26 = sphi %s2966_s26, %s3527_s26   ;;  %s2803_s1 = sphi %s2964_s1, %s3526_s1   ;;  %s2799_s5 = sphi %s2962_s5, %s3525_s5   ;;  %s2795_s25 = sphi %s2960_s25, %s3524_s25   ;;  %s2791_s24 = sphi %s2958_s24, %s3523_s24   ;;  %s2787_s30 = sphi %s2956_s30, %s3522_s30   ;;  %s2783_s4 = sphi %s2954_s4, %s3521_s4  }
  0x1a   : > { %3466 = sst [smem:[#allocation11_spill]] %s2787_s30  ;;  %s2325_s27 = sadd.s32 4294967294, %s2811_s2  }
  0x1b   : > { %3467 = sst [smem:[#allocation12_spill]] %s2791_s24  ;;  %s49_s7 = sadd.s32 1, %s2803_s1 }
  0x1c   : > { %3468 = sst [smem:[#allocation13_spill]] %s2795_s25  ;;  %p50_p0 = scmp.ge.s32.totalorder %s49_s7, 2 }
  0x1d   : > { %3469 = sst [smem:[#allocation14_spill]] %s2799_s5  ;;  %s52_s28 = sadd.s32 1, %s2807_s26 }
  0x1e   : > { %3470 = sst [smem:[#allocation15_spill]] %s2803_s1  ;;  %p559_p1 = scmp.ne.s32.totalorder %s2791_s24, %s2787_s30 }
  0x1f   : > { %3471 = sst [smem:[#allocation16_spill]] %s2807_s26  ;;  %p560_p2 = scmp.eq.s32.totalorder %s2324_s6, 3 }
  0x20   : > { %3472 = sst [smem:[#allocation17_spill]] %s2811_s2  ;;  %s3529_s7 = smov (%p50_p0, %s49_s7), 0 }
  0x21   : > { %3473 = sst [smem:[#allocation18_spill]] %s3529_s7  ;;  %s3531_s28 = smov (!%p50_p0, %s52_s28), %s2807_s26 }
  0x22   : > { %p3003_p3 = por %p560_p2, %p559_p1  ;;  %p565_p4 = scmp.ne.s32.totalorder %s2787_s30, %s2783_s4 }
  0x23   : > { %p54_p5 = scmp.ge.s32.totalorder %s3531_s28, 2  ;;  %p566_p6 = scmp.eq.s32.totalorder %s2325_s27, 3 }
  0x24   : > { %s3474_s29 = scalar_select %p3003_p3, 1, 0 }
  0x25   : > { %p2328_p7 = scmp.ge.s32.totalorder %s2811_s2, 1  ;;  %p773_p8 = scmp.lt.s32.totalorder %s2811_s2, 5 }
  0x26   : > { %3475 = sst [smem:[#allocation19_spill]] %s3474_s29  ;;  %s3533_s28 = smov (%p54_p5, %s3531_s28), 0 }
  0x27   : > { %3476 = sst [smem:[#allocation20_spill]] %s3533_s28  ;;  %p3013_p9 = por %p566_p6, %p565_p4 }
  0x28   : > { %p774_p10 = pnand %p2328_p7, %p773_p8  ;;  %s546_s0 = ssub.s32 %s2807_s26, %s3533_s28 }
  0x29   : > { %s3477_s3 = scalar_select %p3013_p9, 1, 0 }
  0x2a   : > { %s549_s6 = sadd.s32 1, %s2791_s24  ;;  %p547_p11 = scmp.eq.s32.totalorder %s546_s0, 0 }
  0x2b   : > { %3478 = sst [smem:[#allocation21_spill]] %s3477_s3  ;;  %777 = sbr.rel (%p774_p10) target bundleno = 3917 (0xf4d), region = 100 }
  0x2c   : > { %s3021_s7 = scalar_select %p547_p11, %s2791_s24, %s549_s6  }
  0x2e   : > { %3479 = sst [smem:[#allocation22_spill]] %s3021_s7 }
  0x32   : > { %s3024_s27 = sand.u32 1, %s2787_s30   ;;  %p892_p12 = scmp.lt.s32.totalorder %s2799_s5, 1 }
  0x33   : > { %p896_p13 = scmp.lt.s32.totalorder %s2795_s25, 1  ;;  %s3482_s3 = sld [smem:[#allocation24_spill]] }
  0x34   : > { %s3028_s1 = scalar_select %p892_p12, %s2799_s5, 1 }
  0x35   : > { %s3044_s20 = scalar_select %p896_p13, %s2795_s25, 1 }
  0x36   : > { %3480 = sst [smem:[#allocation23_spill]] %s3028_s1  ;;  %s2329_s28 = sshll.u32 %s3028_s1, 3 }
  0x37   : > { %s2386_s30 = sshll.u32 %s3044_s20, 4  ;;  %s3486_s29 = sld [smem:[#allocation27_spill]] }
  0x38   : > { %s3487_s22 = sld [smem:[#allocation29_spill]]  ;;  %s3488_s17 = sld [smem:[#allocation30_spill]] }
  0x39   : > { %s895_s4 = scalar_lea.vmem %s3482_s3, %s2329_s28  ;;  %s3489_s15 = sld [smem:[#allocation31_spill]] }
  0x3a   : > { %s2389_s3 = sshll.u32 %s3044_s20, 6  ;;  %s933_s1 = scalar_lea.vmem %s3416_s12, %s3044_s20 }
  0x3b   : > { %s3090_s18 = scalar_lea.vmem %s3415_s11, %s2389_s3  ;;  %s936_s0 = scalar_lea.vmem %s3417_s13, %s3044_s20 }
  0x3c   : > { %s939_s28 = scalar_lea.vmem %s3418_s14, %s3044_s20  ;;  %s875_s21 = scalar_lea.vmem [#allocation4], %s3024_s27 }
  0x3d   : > { %s3058_s6 = scalar_lea.vmem %s3486_s29, %s2386_s30  ;;  %s3080_s29 = scalar_lea.vmem %s3413_s9, %s2386_s30 }
  0x3e   : > { %s3063_s19 = scalar_lea.vmem %s3487_s22, %s2386_s30  ;;  %s911_s24 = scalar_lea.vmem %s3488_s17, %s3044_s20 }
  0x3f   : > { %s914_s25 = scalar_lea.vmem %s3489_s15, %s3044_s20  ;;  %s881_s22 = scalar_lea.vmem [#allocation6], %s3024_s27 }
  0x40   : > { %s3490_s26 = sld [smem:[#allocation13_spill]] }
  0x46   : > { %p2338_p0 = scmp.ne.s32.totalorder %s3490_s26, 0 }
  0x47   : > { %v954_v0 = vld [vmem:[%s895_s4] sm:$0xff] (!%p2338_p0)  ;;  %vm957_vm0 = vcmask (!%p2338_p0), 261120   ;;  %s3491_s16 = sld [smem:[#allocation25_spill]] (!%p2338_p0)  ;;  %s3492_s15 = sld [smem:[#allocation26_spill]] (!%p2338_p0) }
  0x48   : > { %953 = sbr.rel (%p2338_p0) target bundleno = 386 (0x182), region = 104  ;;  %v958_v1 = vsel (!%p2338_p0), %vm957_vm0, %v954_v0, 0.0 }
  0x49   : > { %959 = vadd.xlane.f32.xlu0 (!%p2338_p0), %v958_v1 }
  0x4d   : > { %v2339_v11 = vld [vmem:[%s3491_s16] ss:$0 sm:$0xff] (!%p2338_p0) }
  0x4e   : > { %v2340_v13 = vld [vmem:[%s3492_s15] ss:$0 sm:$0xff] (!%p2338_p0) }
  0xd6   : > { %v960_v2 = vpop.xlane.xlu0 %959 }
  0xd7   : > { %v962_v3 = vmul.f32 0.03125, %v960_v2 }
  0xd9   : > { %v963_v4 = vsub.f32 %v954_v0, %v962_v3 }
  0xdb   : > { %v964_v5 = vmul.f32 %v963_v4, %v963_v4 }
  0xdd   : > { %v965_v6 = vsel %vm957_vm0, %v964_v5, 0.0 }
  0xde   : > { %966 = vadd.xlane.f32.xlu0 %v965_v6 }
 0x16b   : > { %v967_v7 = vpop.xlane.xlu0 %966 }
 0x16c   : > { %v968_v8 = vmul.f32 0.03125, %v967_v7 }
 0x16e   : > { %v969_v9 = vadd.f32 1e-05, %v968_v8 }
 0x170   : > { %2633 = vrsqrt.f32 %v969_v9 }
 0x17a   : > { %v2634_v10 = vpop.eup %2633 }
 0x17b   : > { %v971_v12 = vmul.f32 %v2634_v10, %v963_v4 }
 0x17d   : > { %v978_v14 = vmul.f32 %v2339_v11, %v971_v12 }
 0x17f   : > { %v985_v15 = vadd.f32 %v2340_v13, %v978_v14 }
 0x181   : > { %986 = vst.msk [vmem:[#allocation2] sm:$0xff] %vm957_vm0, %v985_v15 }
 0x182 PF: > { %v2635_v16 = vld [vmem:[%s3058_s6] sm:$0xff]   ;;  %v2813_v17 = vmov 0.0   ;;  %v2636_v18 = vld [vmem:[%s3058_s6 + $0x8] sm:$0xff]   ;;  %vm2814_vm1 = vmmov 0   ;;  %vm1012_vm2 = vcmask 261120   ;;  %s3493_s2 = sld [smem:[#allocation28_spill]] }
 0x183   : > { %2430 = vmatprep.subr.bf16.mxu0 %v2813_v17  ;;  %2450 = vmatprep.subr.bf16.mxu1 %v2813_v17  ;;  %s2815_s30 = smov 120   ;;  %s2816_s5 = smov 96   ;;  %vm1060_vm3 = vcmask 64512   ;;  %vm1125_vm4 = vcmask 1043456   ;;  %vm1285_vm5 = vcmask 130112   ;;  %vm1402_vm6 = vcmask 195712  }
 0x184   : > { %2431 = vmatpush3.bf16.msra.mxu0 %v2635_v16  ;;  %2434 = vmatprep.mubr.msk.bf16.mxu0 %vm2814_vm1, %v2813_v17  ;;  %s2817_s3 = smov 80   ;;  %s2818_s26 = smov 88   ;;  %vm1519_vm7 = vcmask 261312  }
 0x185   : > { %2432 = vmatprep.subr.bf16.mxu0 %v2813_v17  ;;  %2452 = vmatprep.mubr.msk.bf16.mxu1 %vm2814_vm1, %v2813_v17  ;;  %s2819_s16 = smov 72   ;;  %s2820_s4 = smov 112  }
 0x186   : > { %s2821_s17 = smov 104   ;;  %s2822_s15 = smov 56  }
 0x187   : > { %s2823_s6 = smov 64   ;;  %s2824_s23 = smov 40  }
 0x188   : > { %v3122_v19 = vld [vmem:[#allocation2] sm:$0xff]  ;;  %2433 = vmatpush3.bf16.msra.mxu0 %v2636_v18  ;;  %s3494_s7 = scalar_lea.vmem %s3493_s2, %s3044_s20  ;;  %s2825_s2 = smov 48  }
 0x189   : > { %v988_v20 = vpack.c.bf16 %v3122_v19, %v3122_v19  ;;  %2438 = vmatprep.subr.bf16.mxu0 %v2813_v17  ;;  %v2341_v21 = vld [vmem:[%s3494_s7] ss:$0 sm:$0xff]  ;;  %s2826_s7 = smov 8  }
 0x18b   : > { %2435 = vmatmul.mubr.msk.bf16.vlgmr.msra.gmra.mrb[0].mxu0 %vm1012_vm2, %v988_v20 }
 0x18c   : > { %2440 = vmatprep.mubr.msk.bf16.mxu0 %vm2814_vm1, %v2813_v17 }
 0x25e   : > { %v1050_v22 = vpop.f32.mrb[0].mxu0 }
 0x25f   : > { %v1051_v23 = vadd.f32 %v2341_v21, %v1050_v22  ;;  %v2436_v24 = vpop.f32.mrb[1].mxu0 }
 0x260   : > { %v1053_v25 = vpop.f32.mrb[2].mxu0 }
 0x261   : > { %v3138_v26 = vpack.c.bf16 %v1051_v23, %v1051_v23  ;;  %v2437_v27 = vpop.f32.mrb[3].mxu0 }
 0x263   : > { %1170 = vrot.lane.b32.xlu1 %v3138_v26, %s2815_s30  ;;  %1058 = vrot.lane.b32.xlu0 %v3138_v26, %s2816_s5  ;;  %s2827_s30 = smov 16   ;;  %s2828_s5 = smov 24  }
 0x267   : > { %1289 = vrot.lane.b32.xlu1 %v3138_v26, %s2817_s3  ;;  %1172 = vrot.lane.b32.xlu0 %v3138_v26, %s2818_s26 }
 0x26b   : > { %1406 = vrot.lane.b32.xlu1 %v3138_v26, %s2819_s16  ;;  %1287 = vrot.lane.b32.xlu0 %v3138_v26, %s2820_s4 }
 0x26f   : > { %1404 = vrot.lane.b32.xlu0 %v3138_v26, %s2821_s17 }
 0x2d5   : > { %v1059_v28 = vpop.permute.xlu0 %1058  ;;  %v1171_v30 = vpop.permute.xlu1 %1170 }
 0x2d6   : > { %v1065_v29 = vsel %vm1060_vm3, %v1059_v28, 0 }
 0x2d7   : > { %2439 = vmatpush3.bf16.xpose.msra.mxu0 %v1065_v29 }
 0x2d8   : > { %2444 = vmatprep.subr.bf16.mxu0 %v2813_v17 }
 0x2d9   : > { %v1173_v31 = vpop.permute.xlu0 %1172  ;;  %v1290_v33 = vpop.permute.xlu1 %1289 }
 0x2da   : > { %v1178_v32 = vsel %vm1060_vm3, %v1173_v31, 0  ;;  %v1295_v34 = vsel %vm1060_vm3, %v1290_v33, 0 }
 0x2db   : > { %2451 = vmatpush3.bf16.xpose.msra.mxu1 %v1178_v32 }
 0x2dc   : > { %2462 = vmatprep.subr.bf16.mxu1 %v2813_v17 }
 0x2dd   : > { %v1407_v35 = vpop.permute.xlu1 %1406  ;;  %v1288_v36 = vpop.permute.xlu0 %1287 }
 0x2de   : > { %2441 = vmatmul.mubr.msk.bf16.vlgmr.msra.gmra.mrb[4].mxu0 %vm1060_vm3, %v3138_v26  ;;  %v1412_v37 = vsel %vm1060_vm3, %v1407_v35, 0 }
 0x2df   : > { %2446 = vmatprep.mubr.msk.bf16.mxu0 %vm2814_vm1, %v2813_v17 }
 0x2e1   : > { %v1405_v38 = vpop.permute.xlu0 %1404 }
 0x2e2   : > { %2453 = vmatmul.mubr.msk.bf16.vlgmr.msra.gmra.mrb[0].mxu1 %vm1060_vm3, %v1171_v30 }
 0x2e3   : > { %2463 = vmatpush3.bf16.xpose.msra.mxu1 %v1295_v34  ;;  %2464 = vmatprep.mubr.msk.bf16.mxu1 %vm2814_vm1, %v2813_v17 }
 0x2e4   : > { %2474 = vmatprep.subr.bf16.mxu1 %v2813_v17 }
 0x2ea   : > { %2465 = vmatmul.mubr.msk.bf16.vlgmr.msra.gmra.mrb[4].mxu1 %vm1060_vm3, %v1288_v36 }
 0x2eb   : > { %2475 = vmatpush3.bf16.xpose.msra.mxu1 %v1412_v37  ;;  %2476 = vmatprep.mubr.msk.bf16.mxu1 %vm2814_vm1, %v2813_v17 }
 0x2ec   : > { %2486 = vmatprep.subr.bf16.mxu1 %v2813_v17 }
 0x2f2   : > { %2477 = vmatmul.mubr.msk.bf16.vlgmr.msra.gmra.mrb[8].mxu1 %vm1060_vm3, %v1405_v38 }
 0x2f3   : > { %2490 = vmatprep.mubr.msk.bf16.mxu1 %vm2814_vm1, %v2813_v17 }
 0x3b1   : > { %v1101_v39 = vpop.f32.mrb[4].mxu0 }
 0x3b2   : > { %v1107_v40 = vmul.f32 0.35355338, %v1101_v39  ;;  %v2442_v41 = vpop.f32.mrb[5].mxu0 }
 0x3b3   : > { %v1104_v42 = vpop.f32.mrb[6].mxu0 }
 0x3b4   : > { %v2443_v43 = vpop.f32.mrb[7].mxu0  ;;  %v1108_v44 = vsel %vm1060_vm3, %v1107_v40, -inf }
 0x3b5   : > { %v1214_v45 = vpop.f32.mrb[0].mxu1  ;;  %1109 = vmax.xlane.f32.xlu1 %v1108_v44 }
 0x3b6   : > { %v1220_v46 = vmul.f32 0.35355338, %v1214_v45  ;;  %v2454_v47 = vpop.f32.mrb[1].mxu1 }
 0x3b7   : > { %v1217_v48 = vpop.f32.mrb[2].mxu1 }
 0x3b8   : > { %v2455_v49 = vpop.f32.mrb[3].mxu1  ;;  %v1221_v50 = vsel %vm1060_vm3, %v1220_v46, -inf }
 0x3b9   : > { %1222 = vmax.xlane.f32.xlu0 %v1221_v50 }
 0x3bd   : > { %v1331_v51 = vpop.f32.mrb[4].mxu1 }
 0x3be   : > { %v1337_v52 = vmul.f32 0.35355338, %v1331_v51  ;;  %v2466_v53 = vpop.f32.mrb[5].mxu1 }
 0x3bf   : > { %v1334_v54 = vpop.f32.mrb[6].mxu1  ;;  %v2637_v53 = vld [vmem:[%s3063_s19] sm:$0xff]  }
 0x3c0   : > { %v2467_v55 = vpop.f32.mrb[7].mxu1  ;;  %v1338_v56 = vsel %vm1060_vm3, %v1337_v52, -inf  ;;  %2487 = vmatpush3.bf16.msra.mxu1 %v2637_v53  ;;  %v2638_v54 = vld [vmem:[%s3063_s19 + $0x8] sm:$0xff]   ;;  %v2363_v53 = vld [vmem:[%s933_s1] ss:$0 sm:$0xff]  ;;  %s3499_s19 = sld [smem:[#allocation13_spill]] }
 0x3c1   : > { %1339 = vmax.xlane.f32.xlu0 %v1338_v56  ;;  %2488 = vmatprep.subr.bf16.mxu1 %v2813_v17 }
 0x3c4   : > { %2489 = vmatpush3.bf16.msra.mxu1 %v2638_v54 }
 0x3c5   : > { %v1448_v57 = vpop.f32.mrb[8].mxu1  ;;  %2502 = vmatprep.subr.bf16.mxu1 %v2813_v17 }
 0x3c6   : > { %v1454_v58 = vmul.f32 0.35355338, %v1448_v57  ;;  %v2478_v59 = vpop.f32.mrb[9].mxu1  ;;  %p2374_p1 = scmp.ne.s32.totalorder %s3499_s19, 1 }
 0x3c7   : > { %v1451_v60 = vpop.f32.mrb[10].mxu1  ;;  %vm2830_vm8 = vmmov (!%p2374_p1), 0   ;;  %s3504_s1 = sld [smem:[#allocation35_spill]] (!%p2374_p1)  ;;  %vm1966_vm9 = vcmask (!%p2374_p1), 16384   ;;  %s3506_s19 = sld [smem:[#allocation36_spill]] (!%p2374_p1)  ;;  %vm1999_vm13 = vcmask (!%p2374_p1), 0  }
 0x3c8   : > { %v2479_v61 = vpop.f32.mrb[11].mxu1  ;;  %v1455_v62 = vsel %vm1060_vm3, %v1454_v58, -inf  ;;  %s3510_s17 = sld [smem:[#allocation40_spill]] (!%p2374_p1) }
 0x3c9   : > { %1456 = vmax.xlane.f32.xlu1 %v1455_v62 }
 0x442   : > { %v1110_v63 = vpop.xlane.xlu1 %1109 }
 0x443   : > { %v1111_v0 = vsub.f32 %v1107_v40, %v1110_v63 }
 0x445   : > { %v1112_v1 = vmul.f32 1.442695, %v1111_v0 }
 0x446   : > { %v1223_v2 = vpop.xlane.xlu0 %1222 }
 0x447   : > { %2649 = vpow2.f32 %v1112_v1  ;;  %v1224_v3 = vsub.f32 %v1220_v46, %v1223_v2 }
 0x449   : > { %v1225_v4 = vmul.f32 1.442695, %v1224_v3 }
 0x44b   : > { %2651 = vpow2.f32 %v1225_v4  ;;  %v2353_v4 = vld [vmem:[%s911_s24] ss:$0 sm:$0xff]  ;;  %s3500_s24 = sld [smem:[#allocation32_spill]] (!%p2374_p1) }
 0x44e   : > { %v1340_v5 = vpop.xlane.xlu0 %1339 }
 0x44f   : > { %v1341_v6 = vsub.f32 %v1337_v52, %v1340_v5 }
 0x451   : > { %v2650_v7 = vpop.eup %2649  ;;  %v1342_v8 = vmul.f32 1.442695, %v1341_v6  ;;  %s3501_s16 = smov (!%p2374_p1), %s3500_s24 }
 0x452   : > { %v1114_v9 = vsel %vm1060_vm3, %v2650_v7, 0.0 }
 0x453   : > { %2653 = vpow2.f32 %v1342_v8  ;;  %1115 = vadd.xlane.f32.xlu0 %v1114_v9 }
 0x455   : > { %v2652_v10 = vpop.eup %2651 }
 0x456   : > { %v1227_v11 = vsel %vm1060_vm3, %v2652_v10, 0.0  ;;  %v1457_v14 = vpop.xlane.xlu1 %1456 }
 0x457   : > { %1228 = vadd.xlane.f32.xlu1 %v1227_v11  ;;  %v1458_v15 = vsub.f32 %v1454_v58, %v1457_v14 }
 0x459   : > { %v1459_v16 = vmul.f32 1.442695, %v1458_v15 }
 0x45b   : > { %2655 = vpow2.f32 %v1459_v16 }
 0x45d   : > { %v2654_v12 = vpop.eup %2653 }
 0x45e   : > { %v1344_v13 = vsel %vm1060_vm3, %v2654_v12, 0.0 }
 0x45f   : > { %1345 = vadd.xlane.f32.xlu0 %v1344_v13 }
 0x465   : > { %v2656_v18 = vpop.eup %2655 }
 0x466   : > { %v1461_v20 = vsel %vm1060_vm3, %v2656_v18, 0.0 }
 0x468   : > { %1233 = vrot.lane.b32.xlu1 %v3138_v26, %s2822_s15  ;;  %s3497_s15 = scalar_lea.vmem %s3412_s8, %s3044_s20 }
 0x475   : > { %1120 = vrot.lane.b32.xlu0 %v3138_v26, %s2823_s6 }
 0x479   : > { %1467 = vrot.lane.b32.xlu0 %v3138_v26, %s2824_s23  ;;  %s3498_s23 = scalar_lea.vmem %s3414_s10, %s3044_s20 }
 0x48c   : > { %1462 = vadd.xlane.f32.xlu1 %v1461_v20  ;;  %v2640_v20 = vld [vmem:[%s3080_s29 + $0x8] sm:$0xff]  }
 0x49d   : > { %1350 = vrot.lane.b32.xlu1 %v3138_v26, %s2825_s2 }
 0x4e0   : > { %v1116_v21 = vpop.xlane.xlu0 %1115 }
 0x4e1   : > { %2657 = vrcp.f32 %v1116_v21 }
 0x4e4   : > { %v1229_v22 = vpop.xlane.xlu1 %1228 }
 0x4e5   : > { %2659 = vrcp.f32 %v1229_v22 }
 0x4e8   : > { %v1234_v29 = vpop.permute.xlu1 %1233 }
 0x4e9   : > { %v1239_v32 = vsel %vm1125_vm4, %v1234_v29, 0 }
 0x4eb   : > { %v2658_v23 = vpop.eup %2657 }
 0x4ec   : > { %v1346_v24 = vpop.xlane.xlu0 %1345  ;;  %v1118_v25 = vmul.f32 %v2658_v23, %v2650_v7 }
 0x4ed   : > { %2661 = vrcp.f32 %v1346_v24 }
 0x4ee   : > { %v1119_v30 = vpack.c.bf16 %v1118_v25, %v1118_v25  ;;  %v2357_v25 = vld [vmem:[%s914_s25] ss:$0 sm:$0xff] }
 0x4ef   : > { %v2660_v31 = vpop.eup %2659 }
 0x4f0   : > { %v1121_v27 = vpop.permute.xlu0 %1120  ;;  %v1231_v26 = vmul.f32 %v2660_v31, %v2652_v10 }
 0x4f1   : > { %v1127_v28 = vsel %vm1125_vm4, %v1121_v27, 0 }
 0x4f2   : > { %2445 = vmatpush3.bf16.msra.mxu0 %v1127_v28  ;;  %v1232_v33 = vpack.c.bf16 %v1231_v26, %v1231_v26  ;;  %v2358_v28 = vld [vmem:[%s3497_s15] ss:$0 sm:$0xff]  ;;  %v2643_v26 = vld [vmem:[%s3090_s18 + $0x10] sm:$0xff]  }
 0x4f3   : > { %2456 = vmatprep.subr.bf16.mxu0 %v2813_v17 }
 0x4f4   : > { %v1468_v39 = vpop.permute.xlu0 %1467 }
 0x4f5   : > { %2447 = vmatmul.mubr.msk.bf16.vlgmr.msra.gmra.mrb[8].mxu0 %vm1060_vm3, %v1119_v30  ;;  %v1473_v41 = vsel %vm1125_vm4, %v1468_v39, 0 }
 0x4f6   : > { %2457 = vmatpush3.bf16.msra.mxu0 %v1239_v32  ;;  %2458 = vmatprep.mubr.msk.bf16.mxu0 %vm2814_vm1, %v2813_v17  ;;  %v2642_v32 = vld [vmem:[%s3090_s18 + $0x8] sm:$0xff]  }
 0x4f7   : > { %2468 = vmatprep.subr.bf16.mxu0 %v2813_v17  ;;  %v2662_v34 = vpop.eup %2661 }
 0x4f8   : > { %v1348_v36 = vmul.f32 %v2662_v34, %v2654_v12  ;;  %v2645_v34 = vld [vmem:[%s3090_s18 + $0x20] sm:$0xff]  }
 0x4fa   : > { %v1349_v40 = vpack.c.bf16 %v1348_v36, %v1348_v36  ;;  %v2647_v36 = vld [vmem:[%s3090_s18 + $0x30] sm:$0xff]  }
 0x4fd   : > { %2459 = vmatmul.mubr.msk.bf16.vlgmr.msra.gmra.mrb[12].mxu0 %vm1060_vm3, %v1232_v33  ;;  %v2644_v33 = vld [vmem:[%s3090_s18 + $0x18] sm:$0xff]  }
 0x4fe   : > { %2470 = vmatprep.mubr.msk.bf16.mxu0 %vm2814_vm1, %v2813_v17 }
 0x519   : > { %v1463_v35 = vpop.xlane.xlu1 %1462 }
 0x51a   : > { %2663 = vrcp.f32 %v1463_v35  ;;  %v2646_v35 = vld [vmem:[%s3090_s18 + $0x28] sm:$0xff]  }
 0x51d   : > { %v1351_v37 = vpop.permute.xlu1 %1350 }
 0x51e   : > { %v1356_v38 = vsel %vm1125_vm4, %v1351_v37, 0  ;;  %v2648_v37 = vld [vmem:[%s3090_s18 + $0x38] sm:$0xff]  }
 0x51f   : > { %2469 = vmatpush3.bf16.msra.mxu0 %v1356_v38  ;;  %v2359_v38 = vld [vmem:[%s3498_s23] ss:$0 sm:$0xff]  ;;  %s3503_s23 = sld [smem:[#allocation33_spill]] (!%p2374_p1) }
 0x520   : > { %2480 = vmatprep.subr.bf16.mxu0 %v2813_v17 }
 0x522   : > { %2471 = vmatmul.mubr.msk.bf16.vlgmr.msra.gmra.mrb[16].mxu0 %vm1060_vm3, %v1349_v40 }
 0x523   : > { %2481 = vmatpush3.bf16.msra.mxu0 %v1473_v41  ;;  %2482 = vmatprep.mubr.msk.bf16.mxu0 %vm2814_vm1, %v2813_v17 }
 0x524   : > { %v2664_v42 = vpop.eup %2663  ;;  %2494 = vmatprep.subr.bf16.mxu0 %v2813_v17 }
 0x525   : > { %v1465_v43 = vmul.f32 %v2664_v42, %v2656_v18  ;;  %v2639_v18 = vld [vmem:[%s3080_s29] sm:$0xff]   ;;  %s3502_s29 = sld [smem:[#allocation34_spill]] (!%p2374_p1) }
 0x527   : > { %v1466_v44 = vpack.c.bf16 %v1465_v43, %v1465_v43 }
 0x52a   : > { %2483 = vmatmul.mubr.msk.bf16.vlgmr.msra.gmra.mrb[20].mxu0 %vm1060_vm3, %v1466_v44 }
 0x52b   : > { %2498 = vmatprep.mubr.msk.bf16.mxu0 %vm2814_vm1, %v2813_v17  ;;  %2495 = vmatpush3.bf16.msra.mxu0 %v2639_v18  ;;  %v1848_v18 = vld [vmem:[%s3503_s23] sm:$0x1] (!%p2374_p1) }
 0x52c   : > { %2496 = vmatprep.subr.bf16.mxu0 %v2813_v17 }
 0x52f   : > { %2497 = vmatpush3.bf16.msra.mxu0 %v2640_v20 }
 0x5c8   : > { %v1163_v45 = vpop.f32.mrb[8].mxu0 }
 0x5c9   : > { %1169 = vst.msk [vmem:[#allocation3] sm:$0xff] %vm1060_vm3, %v1163_v45  ;;  %v2448_v46 = vpop.f32.mrb[9].mxu0 }
 0x5ca   : > { %v1166_v47 = vpop.f32.mrb[10].mxu0 }
 0x5cb   : > { %v2449_v48 = vpop.f32.mrb[11].mxu0 }
 0x5d0   : > { %v1275_v49 = vpop.f32.mrb[12].mxu0 }
 0x5d1   : > { %1282 = vrot.lane.b32.xlu1 %v1275_v49, %s2826_s7  ;;  %v2460_v50 = vpop.f32.mrb[13].mxu0  ;;  %s3505_s7 = sld [smem:[#allocation23_spill]] (!%p2374_p1) }
 0x5d2   : > { %v1278_v51 = vpop.f32.mrb[14].mxu0 }
 0x5d3   : > { %v2461_v52 = vpop.f32.mrb[15].mxu0 }
 0x5d7   : > { %s3507_s3 = scalar_lea.vmem (!%p2374_p1), %s3506_s19, %s3505_s7  ;;  %s3511_s15 = scalar_lea.vmem (!%p2374_p1), %s3510_s17, %s3505_s7 }
 0x5f5   : > { %v1392_v55 = vpop.f32.mrb[16].mxu0 }
 0x5f6   : > { %1399 = vrot.lane.b32.xlu0 %v1392_v55, %s2827_s30  ;;  %v2472_v56 = vpop.f32.mrb[17].mxu0 }
 0x5f7   : > { %v1395_v57 = vpop.f32.mrb[18].mxu0 }
 0x5f8   : > { %v2473_v58 = vpop.f32.mrb[19].mxu0 }
 0x5fd   : > { %v1509_v59 = vpop.f32.mrb[20].mxu0 }
 0x5fe   : > { %1516 = vrot.lane.b32.xlu1 %v1509_v59, %s2828_s5  ;;  %v2484_v60 = vpop.f32.mrb[21].mxu0 }
 0x5ff   : > { %v1512_v61 = vpop.f32.mrb[22].mxu0 }
 0x600   : > { %v2485_v62 = vpop.f32.mrb[23].mxu0 }
 0x643   : > { %v1283_v63 = vpop.permute.xlu1 %1282 }
 0x644   : > { %1286 = vst.msk [vmem:[#allocation3] sm:$0xff] %vm1285_vm5, %v1283_v63 }
 0x668   : > { %v1400_v0 = vpop.permute.xlu0 %1399 }
 0x669   : > { %1403 = vst.msk [vmem:[#allocation3] sm:$0xff] %vm1402_vm6, %v1400_v0 }
 0x670   : > { %v1517_v1 = vpop.permute.xlu1 %1516 }
 0x671   : > { %1520 = vst.msk [vmem:[#allocation3] sm:$0xff] %vm1519_vm7, %v1517_v1 }
 0x678   : > { %v1521_v2 = vld [vmem:[#allocation3] sm:$0xff] }
 0x679   : > { %v1522_v3 = vpack.c.bf16 %v1521_v2, %v1521_v2 }
 0x67b   : > { %2491 = vmatmul.mubr.msk.bf16.vlgmr.msra.gmra.mrb[12].mxu1 %vm1012_vm2, %v1522_v3 }
 0x67c   : > { %2518 = vmatprep.mubr.msk.bf16.mxu1 %vm2814_vm1, %v2813_v17 }
 0x74e   : > { %v1583_v5 = vpop.f32.mrb[12].mxu1 }
 0x74f   : > { %v1584_v6 = vadd.f32 %v2353_v4, %v1583_v5  ;;  %v2492_v7 = vpop.f32.mrb[13].mxu1 }
 0x750   : > { %v1586_v8 = vpop.f32.mrb[14].mxu1 }
 0x751   : > { %v2493_v9 = vpop.f32.mrb[15].mxu1  ;;  %v1589_v10 = vadd.f32 %v1584_v6, %v3122_v19  ;;  %v2641_v19 = vld [vmem:[%s3090_s18] sm:$0xff]  }
 0x752   : > { %2503 = vmatpush3.bf16.msra.mxu1 %v2641_v19  ;;  %v2372_v6 = vld [vmem:[%s936_s0] ss:$0 sm:$0xff]  ;;  %s3508_s0 = sld [smem:[#allocation39_spill]] (!%p2374_p1) }
 0x753   : > { %v1592_v11 = vsel %vm1012_vm2, %v1589_v10, 0.0  ;;  %2504 = vmatprep.subr.bf16.mxu1 %v2813_v17  ;;  %v2373_v8 = vld [vmem:[%s939_s28] ss:$0 sm:$0xff] }
 0x754   : > { %1593 = vadd.xlane.f32.xlu0 %v1592_v11  ;;  %v2673_v11 = vld [vmem:[%s3500_s24] sm:$0xff] (!%p2374_p1)  }
 0x756   : > { %2505 = vmatpush3.bf16.msra.mxu1 %v2642_v32 }
 0x757   : > { %2506 = vmatprep.subr.bf16.mxu1 %v2813_v17 }
 0x758   : > { %s3509_s20 = scalar_lea.vmem (!%p2374_p1), %s3508_s0, %s3505_s7 }
 0x75a   : > { %2507 = vmatpush3.bf16.msra.mxu1 %v2643_v26 }
 0x75b   : > { %2508 = vmatprep.subr.bf16.mxu1 %v2813_v17 }
 0x75e   : > { %2509 = vmatpush3.bf16.msra.mxu1 %v2644_v33  ;;  %v2831_v33 = vmov (!%p2374_p1), 0  }
 0x75f   : > { %2510 = vmatprep.subr.bf16.mxu1 %v2813_v17  ;;  %2671 = vset.pattern.permute.xlu1 (!%p2374_p1), %v2831_v33 }
 0x760   : > { %2672 = vset.pattern.permute.xlu0 (!%p2374_p1), %v2831_v33 }
 0x762   : > { %2511 = vmatpush3.bf16.msra.mxu1 %v2645_v34  ;;  %v1980_v34 = vlaneseq (!%p2374_p1) }
 0x763   : > { %2512 = vmatprep.subr.bf16.mxu1 %v2813_v17 }
 0x766   : > { %2513 = vmatpush3.bf16.msra.mxu1 %v2646_v35  ;;  %v1981_v35 = vand.u32 (!%p2374_p1), 127, %v1980_v34 }
 0x767   : > { %2514 = vmatprep.subr.bf16.mxu1 %v2813_v17 }
 0x76a   : > { %2515 = vmatpush3.bf16.msra.mxu1 %v2647_v36 }
 0x76b   : > { %2516 = vmatprep.subr.bf16.mxu1 %v2813_v17 }
 0x76e   : > { %2517 = vmatpush3.bf16.msra.mxu1 %v2648_v37 }
 0x7e1   : > { %v1594_v12 = vpop.xlane.xlu0 %1593 }
 0x7e2   : > { %v1596_v13 = vmul.f32 0.03125, %v1594_v12  ;;  %v2829_v12 = vmov (!%p2374_p1), 0.0  }
 0x7e3   : > { %2522 = vmatprep.subr.bf16.mxu0 (!%p2374_p1), %v2829_v12  ;;  %2530 = vmatprep.subr.bf16.mxu1 (!%p2374_p1), %v2829_v12 }
 0x7e4   : > { %v1597_v14 = vsub.f32 %v1589_v10, %v1596_v13  ;;  %v2674_v13 = vld [vmem:[%s3501_s16 + $0x8] sm:$0xff] (!%p2374_p1)  }
 0x7e6   : > { %v1598_v15 = vmul.f32 %v1597_v14, %v1597_v14 }
 0x7e8   : > { %v1599_v16 = vsel %vm1012_vm2, %v1598_v15, 0.0  ;;  %v2675_v15 = vld [vmem:[%s3502_s29] sm:$0xff] (!%p2374_p1)  }
 0x7e9   : > { %1600 = vadd.xlane.f32.xlu1 %v1599_v16  ;;  %v2676_v16 = vld [vmem:[%s3502_s29 + $0x8] sm:$0xff] (!%p2374_p1)  }
 0x876   : > { %v1601_v21 = vpop.xlane.xlu1 %1600 }
 0x877   : > { %v1602_v22 = vmul.f32 0.03125, %v1601_v21 }
 0x879   : > { %v1603_v23 = vadd.f32 1e-05, %v1602_v22 }
 0x87b   : > { %2665 = vrsqrt.f32 %v1603_v23 }
 0x885   : > { %v2666_v24 = vpop.eup %2665 }
 0x886   : > { %v1605_v27 = vmul.f32 %v2666_v24, %v1597_v14 }
 0x888   : > { %v1612_v29 = vmul.f32 %v2357_v25, %v1605_v27  ;;  %v1910_v27 = vld [vmem:[%s3504_s1] sm:$0x1] (!%p2374_p1) }
 0x88a   : > { %v1619_v30 = vadd.f32 %v2358_v28, %v1612_v29 }
 0x88c   : > { %v1620_v31 = vpack.c.bf16 %v1619_v30, %v1619_v30 }
 0x88e   : > { %2499 = vmatmul.mubr.msk.bf16.vlgmr.msra.gmra.mrb[24].mxu0 %vm1012_vm2, %v1620_v31 }
 0x88f   : > { %2523 = vmatpush3.bf16.msra.mxu0 (!%p2374_p1), %v2673_v11  ;;  %2526 = vmatprep.mubr.msk.bf16.mxu0 (!%p2374_p1), %vm2830_vm8, %v2829_v12 }
 0x890   : > { %2524 = vmatprep.subr.bf16.mxu0 (!%p2374_p1), %v2829_v12 }
 0x893   : > { %2525 = vmatpush3.bf16.msra.mxu0 (!%p2374_p1), %v2674_v13 }
 0x961   : > { %v1681_v39 = vpop.f32.mrb[24].mxu0 }
 0x962   : > { %v1682_v40 = vadd.f32 %v2359_v38, %v1681_v39  ;;  %v2500_v41 = vpop.f32.mrb[25].mxu0 }
 0x963   : > { %v1684_v42 = vpop.f32.mrb[26].mxu0 }
 0x964   : > { %v1688_v43 = vmul.f32 0.044715, %v1682_v40  ;;  %v2501_v44 = vpop.f32.mrb[27].mxu0  ;;  %v1687_v17 = vmul.f32 0.5, %v1682_v40 }
 0x966   : > { %v1689_v45 = vmul.f32 %v1688_v43, %v1682_v40 }
 0x968   : > { %v1690_v46 = vmul.f32 %v1689_v45, %v1682_v40  ;;  %v2004_v45 = vld [vmem:[%s3507_s3] sm:$0x1] (!%p2374_p1) }
 0x96a   : > { %v1691_v47 = vadd.f32 %v1690_v46, %v1682_v40 }
 0x96c   : > { %v1692_v48 = vmul.f32 0.7978846, %v1691_v47 }
 0x96e   : > { %2667 = vtanh.f32 %v1692_v48 }
 0x978   : > { %v2668_v49 = vpop.eup %2667 }
 0x979   : > { %v1694_v50 = vadd.f32 1.0, %v2668_v49 }
 0x97b   : > { %v1695_v51 = vmul.f32 %v1694_v50, %v1687_v17  ;;  %v2009_v17 = vshrl.u32 (!%p2374_p1), %v1980_v34, 7 }
 0x97d   : > { %v1696_v52 = vpack.c.bf16 %v1695_v51, %v1695_v51  ;;  %v2010_v51 = vsub.s32 (!%p2374_p1), 0, %v2009_v17 }
 0x97f   : > { %2519 = vmatmul.mubr.bf16.vlgmr.msra.gmra.mrb[16].mxu1 %v1696_v52 }
 0x980   : > { %2534 = vmatprep.mubr.msk.bf16.mxu1 (!%p2374_p1), %vm2830_vm8, %v2829_v12  ;;  %2531 = vmatpush3.bf16.msra.mxu1 (!%p2374_p1), %v2675_v15 }
 0x981   : > { %2532 = vmatprep.subr.bf16.mxu1 (!%p2374_p1), %v2829_v12 }
 0x984   : > { %2533 = vmatpush3.bf16.msra.mxu1 (!%p2374_p1), %v2676_v16 }
 0xa52   : > { %v1802_v54 = vpop.f32.mrb[16].mxu1 }
 0xa53   : > { %v1803_v55 = vadd.f32 %v2363_v53, %v1802_v54  ;;  %v2520_v56 = vpop.f32.mrb[17].mxu1 }
 0xa54   : > { %v1805_v57 = vpop.f32.mrb[18].mxu1 }
 0xa55   : > { %v2521_v58 = vpop.f32.mrb[19].mxu1  ;;  %v1808_v59 = vadd.f32 %v1803_v55, %v1619_v30 }
 0xa57   : > { %v1811_v60 = vsel %vm1012_vm2, %v1808_v59, 0.0 }
 0xa58   : > { %1812 = vadd.xlane.f32.xlu0 %v1811_v60 }
 0xae5   : > { %v1813_v61 = vpop.xlane.xlu0 %1812 }
 0xae6   : > { %v1814_v62 = vmul.f32 0.03125, %v1813_v61 }
 0xae8   : > { %v1815_v63 = vsub.f32 %v1808_v59, %v1814_v62 }
 0xaea   : > { %v1816_v0 = vmul.f32 %v1815_v63, %v1815_v63 }
 0xaec   : > { %v1817_v1 = vsel %vm1012_vm2, %v1816_v0, 0.0 }
 0xaed   : > { %1818 = vadd.xlane.f32.xlu0 %v1817_v1 }
 0xb7a   : > { %v1819_v2 = vpop.xlane.xlu0 %1818 }
 0xb7b   : > { %v1820_v3 = vmul.f32 0.03125, %v1819_v2 }
 0xb7d   : > { %v1821_v4 = vadd.f32 1e-05, %v1820_v3 }
 0xb7f   : > { %2669 = vrsqrt.f32 %v1821_v4 }
 0xb89   : > { %v2670_v5 = vpop.eup %2669 }
 0xb8a   : > { %v1823_v7 = vmul.f32 %v2670_v5, %v1815_v63  ;;  %1842 = sbr.rel (%p2374_p1) target bundleno = 3868 (0xf1c), region = 108 }
 0xb8c   : > { %v1830_v9 = vmul.f32 %v2372_v6, %v1823_v7 }
 0xb8e   : > { %v1837_v10 = vadd.f32 %v2373_v8, %v1830_v9 }
 0xb90   : > { %1838 = vst.msk [vmem:[#allocation2] sm:$0xff] %vm1012_vm2, %v1837_v10  ;;  %v1843_v14 = vpack.c.bf16 (!%p2374_p1), %v1837_v10, %v1837_v10 }
 0xb92   : > { %2527 = vmatmul.mubr.msk.bf16.vlgmr.msra.gmra.mrb[0].mxu0 %vm1012_vm2, %v1843_v14 }
 0xc65   : > { %v1898_v20 = vpop.f32.mrb[0].mxu0 }
 0xc66   : > { %v1899_v19 = vadd.f32 %v1898_v20, %v1848_v18  ;;  %v2528_v21 = vpop.f32.mrb[1].mxu0 }
 0xc67   : > { %v1901_v22 = vpop.f32.mrb[2].mxu0 }
 0xc68   : > { %2677 = vtanh.f32 %v1899_v19  ;;  %v2529_v23 = vpop.f32.mrb[3].mxu0 }
 0xc72   : > { %v2678_v24 = vpop.eup %2677 }
 0xc73   : > { %v1905_v25 = vpack.c.bf16 %v2678_v24, %v2678_v24 }
 0xc75   : > { %2535 = vmatmul.mubr.msk.bf16.vlgmr.msra.gmra.mrb[0].mxu1 %vm1012_vm2, %v1905_v25 }
 0xd48   : > { %v1960_v28 = vpop.f32.mrb[0].mxu1 }
 0xd49   : > { %v1961_v29 = vadd.f32 %v1960_v28, %v1910_v27  ;;  %v2536_v30 = vpop.f32.mrb[1].mxu1 }
 0xd4a   : > { %v1963_v31 = vpop.f32.mrb[2].mxu1 }
 0xd4b   : > { %1967 = vst.msk [vmem:[%s875_s21] sm:$0x1] %vm1966_vm9, %v1961_v29  ;;  %v2537_v32 = vpop.f32.mrb[3].mxu1  ;;  %v1968_v26 = vsel %vm1966_vm9, %v1961_v29, -inf }
 0xd4c   : > { %1969 = vmax.xlane.f32.xlu0 %v1968_v26 }
 0xdd9   : > { %v1970_v36 = vpop.xlane.xlu0 %1969 }
 0xdda   : > { %v1971_v37 = vsub.f32 %v1961_v29, %v1970_v36  ;;  %vm1982_vm10 = vcmp.eq.f32.partialorder %v1961_v29, %v1970_v36 }
 0xddb   : > { %v1983_v38 = vsel %vm1982_vm10, %v1981_v35, 3 }
 0xddc   : > { %v1972_v39 = vmul.f32 1.442695, %v1971_v37  ;;  %v1984_v40 = vsel %vm1966_vm9, %v1983_v38, 2147483647 }
 0xddd   : > { %v1986_v41 = vshra.s32 %v1984_v40, 16  ;;  %v1985_v46 = vand.u32 65535, %v1984_v40 }
 0xdde   : > { %2679 = vpow2.f32 %v1972_v39 }
 0xddf   : > { %v1988_v42 = vcvt.s32.f32 %v1986_v41  ;;  %v1987_v48 = vcvt.s32.f32 %v1985_v46 }
 0xde1   : > { %1989 = vmin.xlane.f32.xlu1 %v1988_v42 }
 0xde8   : > { %v2680_v43 = vpop.eup %2679 }
 0xde9   : > { %v1974_v44 = vsel %vm1966_vm9, %v2680_v43, 0.0 }
 0xdea   : > { %1975 = vadd.xlane.f32.xlu0 %v1974_v44 }
 0xdf2   : > { %2006 = vperm.xlu1 %2671, %v2004_v45  }
 0xe6e   : > { %v1990_v47 = vpop.xlane.xlu1 %1989 }
 0xe6f   : > { %vm1991_vm11 = vcmp.eq.f32.partialorder %v1988_v42, %v1990_v47  ;;  %v1996_v62 = vcvt.f32.s32 %v1990_v47 }
 0xe70   : > { %v1992_v49 = vsel %vm1991_vm11, %v1987_v48, inf }
 0xe71   : > { %1993 = vmin.xlane.f32.xlu0 %v1992_v49  ;;  %v1997_v0 = vshll.u32 %v1996_v62, 16 }
 0xe72   : > { %v2007_v52 = vpop.permute.xlu1 %2006 }
 0xe73   : > { %v2011_v53 = vrot.slane %v2007_v52, %v2010_v51 }
 0xe75   : > { %vm2012_vm12 = vcmp.eq.s32.totalorder %v1981_v35, %v2011_v53 }
 0xe76   : > { %v2381_v58 = vsel %vm2012_vm12, 1.0, %v2829_v12 }
 0xe77   : > { %v1976_v50 = vpop.xlane.xlu0 %1975 }
 0xe78   : > { %2681 = vrcp.f32 %v1976_v50 }
 0xe79   : > { %2683 = vlog2.f32 %v1976_v50 }
 0xe82   : > { %v2682_v54 = vpop.eup %2681 }
 0xe83   : > { %v2684_v55 = vpop.eup %2683  ;;  %v1978_v56 = vmul.f32 %v2682_v54, %v2680_v43 }
 0xe84   : > { %v2002_v57 = vmul.f32 0.6931472, %v2684_v55 }
 0xe85   : > { %1979 = vst.msk [vmem:[%s881_s22] sm:$0x1] %vm1966_vm9, %v1978_v56 }
 0xe86   : > { %v2003_v59 = vsub.f32 %v1971_v37, %v2002_v57 }
 0xe88   : > { %v2015_v60 = vmul.f32 %v2381_v58, %v2003_v59 }
 0xe8a   : > { %v2016_v61 = vsel %vm1966_vm9, %v2015_v60, 0.0 }
 0xe8b   : > { %2017 = vadd.xlane.f32.xlu0 %v2016_v61 }
 0xefe   : > { %v1994_v63 = vpop.xlane.xlu0 %1993 }
 0xeff   : > { %v1995_v1 = vcvt.f32.s32 %v1994_v63 }
 0xf01   : > { %v1998_v2 = vadd.s32 %v1997_v0, %v1995_v1 }
 0xf03   : > { %2000 = vst.msk [vmem:[%s3509_s20] sm:$0x1] %vm1999_vm13, %v1998_v2 }
 0xf18   : > { %v2018_v3 = vpop.xlane.xlu0 %2017 }
 0xf19   : > { %v2019_v4 = vsub.f32 0.0, %v2018_v3 }
 0xf1b   : > { %2020 = vst.msk [vmem:[%s3511_s15] sm:$0x1] %vm1999_vm13, %v2019_v4 }
 0xf1c PF: > { %s3512_s25 = sld [smem:[#allocation14_spill]]  ;;  %s3514_s1 = sld [smem:[#allocation37_spill]] }
 0xf1d   : > { %s2044_s5 = sshll.u32 %s875_s21, 4  ;;  %s2022_s3 = scalar_lea.sflag [#allocation5], %s3024_s27  ;;  %s2045_s5 = int_to_ptr.vmem [resolvable:$true] %s2044_s5 }
 0xf1e   : > { %s2685_s26 = scalar_lea.vmem %s2045_s5, 16  ;;  %s2832_s7 = smov [#allocation4]  }
 0xf1f   : > { %p2686_p2 = scmp.ne.s32.totalorder %s2045_s5, %s2685_s26  ;;  %s2689_s24 = sshll.u32 %s2832_s7, 4  ;;  %s2690_s24 = int_to_ptr.vmem [resolvable:$false] %s2689_s24 }
 0xf20   : > { %s2691_s0 = scalar_lea.vmem %s2690_s24, 32  ;;  %p2692_p6 = scmp.lt.s32.totalorder %s2045_s5, %s2690_s24 }
 0xf21   : > { %p2687_p4 = pnand %p2686_p2, %p3003_p3  ;;  %p2693_p7 = scmp.lt.s32.totalorder %s2691_s0, %s2685_s26 }
 0xf22   : > { %s2382_s23 = sshll.u32 %s3512_s25, 4  ;;  %s3515_s19 = smov %s3514_s1 }
 0xf23   : > { %s3327_s30 = scalar_lea.hbm %s3514_s1, %s2382_s23  ;;  %p2688_p5 = pneg %p2687_p4 }
 0xf24   : > { %p2694_p8 = por %p2693_p7, %p2692_p6 }
 0xf26   : > { %p2695_p10 = pnand %p2694_p8, %p2688_p5 }
 0xf28   : > { %2698 = shalt.err (!%p2695_p10)
}
 0xf29   : > { %s2699_s21 = scalar_lea.hbm %s3327_s30, 16  ;;  %s2703_s4 = scalar_lea.hbm %s3515_s19, 32 }
 0xf2a   : > { %p2700_p11 = scmp.ne.s32.totalorder %s3327_s30, %s2699_s21  ;;  %p2704_p0 = scmp.lt.u32.totalorder %s3327_s30, %s3515_s19 }
 0xf2b   : > { %p2705_p1 = scmp.lt.u32.totalorder %s2703_s4, %s2699_s21  ;;  %p2707_p4 = scmp.lt.u32.totalorder %s2699_s21, %s3327_s30 }
 0xf2c   : > { %p2701_p12 = pnand %p2700_p11, %p3003_p3 }
 0xf2d   : > { %p2706_p2 = por %p2705_p1, %p2704_p0 }
 0xf2e   : > { %p2702_p13 = pneg %p2701_p12 }
 0xf2f   : > { %p2708_p5 = por %p2707_p4, %p2706_p2 }
 0xf31   : > { %p2709_p6 = pnand %p2708_p5, %p2702_p13 }
 0xf33   : > { %2712 = shalt.err (!%p2709_p6)
}
 0xf34   : > { %2538 = dma.vmem_to_hbm [thread:$0]  (%p3003_p3), %s2045_s5, 16, %s3327_s30, %s2022_s3  }
 0xf35   : > { %s3516_s1 = sld [smem:[#allocation38_spill]]  ;;  %s2057_s24 = sshll.u32 %s881_s22, 4  ;;  %s2058_s24 = int_to_ptr.vmem [resolvable:$true] %s2057_s24 }
 0xf36   : > { %s2026_s0 = scalar_lea.sflag [#allocation7], %s3024_s27  ;;  %s2713_s21 = scalar_lea.vmem %s2058_s24, 16 }
 0xf37   : > { %p2714_p7 = scmp.ne.s32.totalorder %s2058_s24, %s2713_s21  ;;  %s2833_s20 = smov [#allocation6]  }
 0xf38   : > { %s2717_s28 = sshll.u32 %s2833_s20, 4  ;;  %s2718_s28 = int_to_ptr.vmem [resolvable:$false] %s2717_s28 }
 0xf39   : > { %p2715_p8 = pnand %p2714_p7, %p3003_p3  ;;  %s2719_s4 = scalar_lea.vmem %s2718_s28, 32 }
 0xf3a   : > { %p2720_p11 = scmp.lt.s32.totalorder %s2058_s24, %s2718_s28  ;;  %p2721_p12 = scmp.lt.s32.totalorder %s2719_s4, %s2713_s21 }
 0xf3b   : > { %s3517_s7 = smov %s3516_s1  ;;  %s3354_s26 = scalar_lea.hbm %s3516_s1, %s2382_s23 }
 0xf3c   : > { %p2716_p10 = pneg %p2715_p8  ;;  %p2722_p13 = por %p2721_p12, %p2720_p11 }
 0xf3e   : > { %p2723_p0 = pnand %p2722_p13, %p2716_p10 }
 0xf40   : > { %2726 = shalt.err (!%p2723_p0)
}
 0xf41   : > { %s2727_s27 = scalar_lea.hbm %s3354_s26, 16  ;;  %s2731_s23 = scalar_lea.hbm %s3517_s7, 32 }
 0xf42   : > { %p2728_p1 = scmp.ne.s32.totalorder %s3354_s26, %s2727_s27  ;;  %p2732_p5 = scmp.lt.u32.totalorder %s3354_s26, %s3517_s7 }
 0xf43   : > { %p2733_p6 = scmp.lt.u32.totalorder %s2731_s23, %s2727_s27  ;;  %p2735_p8 = scmp.lt.u32.totalorder %s2727_s27, %s3354_s26 }
 0xf44   : > { %p2729_p2 = pnand %p2728_p1, %p3003_p3 }
 0xf45   : > { %p2734_p7 = por %p2733_p6, %p2732_p5 }
 0xf46   : > { %p2730_p4 = pneg %p2729_p2 }
 0xf47   : > { %p2736_p10 = por %p2735_p8, %p2734_p7 }
 0xf49   : > { %p2737_p11 = pnand %p2736_p10, %p2730_p4 }
 0xf4b   : > { %2740 = shalt.err (!%p2737_p11)
}
 0xf4c   : > { %2539 = dma.vmem_to_hbm [thread:$0]  (%p3003_p3), %s2058_s24, 16, %s3354_s26, %s2026_s0  }
 0xf4d PF: > { %s3518_s3 = sld [smem:[#allocation17_spill]]  ;;  %s3519_s17 = sld [smem:[#allocation10_spill]] }
 0xf53   : > { %p2549_p12 = scmp.ge.s32.totalorder %s3518_s3, 2  ;;  %s2075_s18 = sand.u32 1, %s3519_s17  }
 0xf54   : > { %s2076_s2 = scalar_lea.sflag [#allocation5], %s2075_s18 }
 0xf55   : > { %p2543_p13 = pnand %p2549_p12, %p3013_p9 }
 0xf57   : > { %2774 = dma.done.wait (!%p2543_p13), %s2076_s2, 16  }
 0xf58   : > { %2776 = vsyncadd (!%p2543_p13), %s2076_s2, 4294967280  ;;  %s2084_s1 = scalar_lea.sflag [#allocation7], %s2075_s18 }
 0xf59   : > { %2778 = dma.done.wait (!%p2543_p13), %s2084_s1, 16  }
 0xf5a   : > { %2780 = vsyncadd (!%p2543_p13), %s2084_s1, 4294967280  ;;  %s40_s2 = sadd.s32 1, %s3518_s3   ;;  %s3521_s4 = sld [smem:[#allocation11_spill]] }
 0xf5b   : > { %p37_p0 = scmp.ge.s32.totalorder %s40_s2, 6   ;;  %s3522_s30 = sld [smem:[#allocation12_spill]] }
 0xf5c   : > { %s3523_s24 = sld [smem:[#allocation22_spill]]  ;;  %s3524_s25 = sld [smem:[#allocation15_spill]] }
 0xf5d   : > { %s3525_s5 = sld [smem:[#allocation16_spill]]  ;;  %s3526_s1 = sld [smem:[#allocation18_spill]] }
 0xf5e   : > { %s3527_s26 = sld [smem:[#allocation20_spill]]  ;;  %39 = sbr.rel (!%p37_p0) target bundleno = 25 (0x19), region = 223 }
 0xf65   :  { %2100 = vsyncpa [#allocation5], 1 }
 0xf66   :  { %2102 = vsyncpa [#allocation5 + $0x1], 1 }
 0xf67   :  { %2103 = vsyncpa [#allocation7], 1 }
 0xf68   :  { %2105 = vsyncpa [#allocation7 + $0x1], 1 }

</bundles_post_ra>
